<compile_context>
chip_gen: v7x
topology: tpu7x:2x2x1
jax: 0.10.0
libtpu: 0.0.40
codegen_flags: <defaults>
</compile_context>

<pallas_src>
import functools

import jax
import jax.numpy as jnp
from jax import lax
from jax.experimental import pallas as pl
from jax.experimental.pallas import tpu as pltpu


def _round_up(x, m):
    return (x + m - 1) // m * m


def _pick_batch_tile(B, T):
    """Batch rows per grid step. Prefer >=2 grid steps (v7x has 2 TensorCores and
    a grid enables x/output tile pipelining) while keeping the block's sublane
    dim (TB*T) 8-aligned; otherwise fall back to a single full-batch tile."""
    if B % 2 == 0 and ((B // 2) * T) % 8 == 0:
        return B // 2
    return B


def _vmem_limit_bytes(TB, T, D, H, Ci_pad, Cs_pad):
    """Scoped-VMEM request derived from the actual operand / intermediate sizes
    (not a hard-coded 32 MiB). 4x headroom, clamped to [4 MiB, 64 MiB]."""
    rows, G = TB * T, 4 * H
    blocked = rows * (D + Ci_pad + Cs_pad) * 4                       # x tile + 2 output tiles (f32)
    weights = (2 * (D * G + H * G) + Ci_pad * G                       # bf16 weights
               + H * Ci_pad + H * Cs_pad) * 2 \
              + (2 * G + Ci_pad + Cs_pad) * 4                         # f32 biases
    interm = rows * (4 * G + 2 * H + Ci_pad + Cs_pad) * 4             # gx / history / logit values
    est = 2 * blocked + weights + interm                              # blocked operands double-buffered
    return int(min(max(4 * est, 4 << 20), 64 << 20))


def make_stackprop_kernel(*, TB, T, D, H, Ci_pad, Cs_pad):
    """Fused StackPropagation forward kernel (reverse=False branch), one batch
    tile of TB rows per grid step. All row-flattened slabs inside the kernel are
    time-major (row = t*TB + b); the HBM-facing x / output blocks are batch-major
    (row = b*T + t)."""
    f32 = jnp.float32
    bf16 = jnp.bfloat16

    def to_time_major(v):                     # (b*T + t) rows -> (t*TB + b) rows
        if TB == 1:
            return v
        w = v.shape[-1]
        return v.reshape(TB, T, w).transpose(1, 0, 2).reshape(T * TB, w)

    def to_batch_major(v):                    # (t*TB + b) rows -> (b*T + t) rows
        if TB == 1:
            return v
        w = v.shape[-1]
        return v.reshape(T, TB, w).transpose(1, 0, 2).reshape(TB * T, w)

    def run_lstm(gx_tm, whh_bf):
        """Single-layer LSTM recurrence (PyTorch gate order i, f, g, o).
        gx_tm: [T*TB, 4H] f32 hoisted input projection (+bias), time-major.
        whh_bf: [H, 4H] bf16. Returns the hidden history [T*TB, H] (f32)."""
        h = jnp.zeros((TB, H), f32)
        c = jnp.zeros((TB, H), f32)
        hs = []
        # Statically unrolled; T is a small compile-time constant so h/c live in
        # vregs and W_hh / bias loads are hoisted.
        # TODO(synk): for T >~ 32 switch to lax.fori_loop(unroll=4..8) to bound
        # live ranges instead of a full static unroll.
        for t in range(T):
            gates = gx_tm[t * TB:(t + 1) * TB, :] + jnp.dot(
                h.astype(bf16), whh_bf, preferred_element_type=f32)   # [TB, 4H]
            # Full-vreg activations: one sigmoid + one tanh over the whole
            # 128-lane gate slab (2 EUP issues/step instead of 4).
            sig = jax.nn.sigmoid(gates)
            tah = jnp.tanh(gates)
            i_g = sig[:, 0:H]
            f_g = sig[:, H:2 * H]
            g_g = tah[:, 2 * H:3 * H]
            o_g = sig[:, 3 * H:4 * H]
            c = f_g * c + i_g * g_g
            h = o_g * jnp.tanh(c)
            hs.append(h)
        # History kept in vregs; no per-step masked scratch stores.
        return jnp.concatenate(hs, axis=0)                            # [T*TB, H]

    def kernel(x_ref,                                                  # [TB*T, D]  batch-major
               wih_i_ref, whh_i_ref, b_i_ref, wout_i_ref, bout_i_ref,  # intent decoder
               wih_se_ref, wih_si_ref, whh_s_ref, b_s_ref, wout_s_ref, bout_s_ref,  # slot decoder
               intent_out_ref,                                         # [TB*T, Ci_pad]
               slot_out_ref):                                          # [TB*T, Cs_pad]
        x_bf = x_ref[...].astype(bf16)

        # Hoisted input projections (row order is irrelevant to the matmul; the
        # embedding half of the slot projection is independent of intent logits
        # so it can overlap the intent recurrence).
        gx_i = jnp.dot(x_bf, wih_i_ref[...], preferred_element_type=f32) + b_i_ref[...]
        gx_s = jnp.dot(x_bf, wih_se_ref[...], preferred_element_type=f32) + b_s_ref[...]
        gx_i_tm = to_time_major(gx_i)       # 128-lane-wide relayout (identity when TB == 1)
        gx_s_tm = to_time_major(gx_s)

        # -- Intent decoder.
        hh_i_tm = run_lstm(gx_i_tm, whh_i_ref[...])
        # Intent head computed exactly ONCE as one [T*TB,H]x[H,Ci_pad] matmul
        # (lane-dense N); result is both the output and the stack-prop input.
        int_logits_tm = jnp.dot(hh_i_tm.astype(bf16), wout_i_ref[...],
                                preferred_element_type=f32) + bout_i_ref[...]
        intent_out_ref[...] = to_batch_major(int_logits_tm)   # full-width unmasked store

        # -- Stack propagation: add the intent-logit half of the slot input
        #    projection. wih_si is zero-padded to Ci_pad rows so the padded logit
        #    lanes contribute exactly 0; together with gx_s this equals
        #    concat([embedding, intent_pred], -1) @ W_ih_slot + b_slot.
        gx_s_tm = gx_s_tm + jnp.dot(int_logits_tm.astype(bf16), wih_si_ref[...],
                                    preferred_element_type=f32)

        # -- Slot decoder.
        hh_s_tm = run_lstm(gx_s_tm, whh_s_ref[...])
        slot_logits_tm = jnp.dot(hh_s_tm.astype(bf16), wout_s_ref[...],
                                 preferred_element_type=f32) + bout_s_ref[...]
        slot_out_ref[...] = to_batch_major(slot_logits_tm)     # full-width unmasked store

    return kernel


def _pad_cols(a, n):
    return jnp.pad(a, ((0, 0), (0, n - a.shape[1])))


@functools.partial(jax.jit, static_argnames=("hidden_dim",))
def stack_propagation_forward(embedding, intent_params, slot_params, *, hidden_dim):
    """StackPropagation.forward, reverse=False branch:
         intent_pred = intent_dec(embedding)
         slot_pred   = slot_dec(concat([embedding, intent_pred], -1))
    Returns (intent_pred [B,T,Ci], slot_pred [B,T,Cs])."""
    B, T, D = embedding.shape
    H = hidden_dim
    Ci = intent_params["w_out"].shape[1]
    Cs = slot_params["w_out"].shape[1]
    Ci_pad = _round_up(max(Ci, 1), 128)
    Cs_pad = _round_up(max(Cs, 1), 128)
    f32, bf16 = jnp.float32, jnp.bfloat16

    x_flat = embedding.reshape(B * T, D).astype(f32)   # free reshape, no transpose

    # MXU operands in bf16 (halves weight DMA/VMEM bytes, matches bf16 MXU peak);
    # all elementwise gate math stays f32 inside the kernel (v5e-safe).
    wih_i = intent_params["w_ih"].astype(bf16)
    whh_i = intent_params["w_hh"].astype(bf16)
    b_i = intent_params["b"].astype(f32)
    wout_i = _pad_cols(intent_params["w_out"], Ci_pad).astype(bf16)   # [H, Ci_pad]
    bout_i = _pad_cols(intent_params["b_out"], Ci_pad).astype(f32)    # [1, Ci_pad]

    # Slot decoder's packed input weight is split so the concat is never built;
    # the intent-logit half is zero-padded to Ci_pad rows for a lane-dense matmul.
    wih_s = slot_params["w_ih"]                                        # [D+Ci, 4H]
    wih_se = wih_s[:D, :].astype(bf16)
    wih_si = jnp.zeros((Ci_pad, 4 * H), f32).at[:Ci, :].set(wih_s[D:, :]).astype(bf16)
    whh_s = slot_params["w_hh"].astype(bf16)
    b_s = slot_params["b"].astype(f32)
    wout_s = _pad_cols(slot_params["w_out"], Cs_pad).astype(bf16)
    bout_s = _pad_cols(slot_params["b_out"], Cs_pad).astype(f32)

    TB = _pick_batch_tile(B, T)
    grid = (B // TB,)
    rows = TB * T

    def full_spec(arr):
        return pl.BlockSpec(arr.shape, lambda i: (0,) * arr.ndim)

    kernel = make_stackprop_kernel(TB=TB, T=T, D=D, H=H, Ci_pad=Ci_pad, Cs_pad=Cs_pad)
    intent_flat, slot_flat = pl.pallas_call(
        kernel,
        grid=grid,
        out_shape=(jax.ShapeDtypeStruct((B * T, Ci_pad), f32),
                   jax.ShapeDtypeStruct((B * T, Cs_pad), f32)),
        in_specs=[
            pl.BlockSpec((rows, D), lambda i: (i, 0)),      # embedding, batch-tiled
            full_spec(wih_i), full_spec(whh_i), full_spec(b_i),
            full_spec(wout_i), full_spec(bout_i),
            full_spec(wih_se), full_spec(wih_si), full_spec(whh_s), full_spec(b_s),
            full_spec(wout_s), full_spec(bout_s),
        ],
        out_specs=(pl.BlockSpec((rows, Ci_pad), lambda i: (i, 0)),
                   pl.BlockSpec((rows, Cs_pad), lambda i: (i, 0))),
        compiler_params=pltpu.CompilerParams(
            dimension_semantics=("parallel",),
            vmem_limit_bytes=_vmem_limit_bytes(TB, T, D, H, Ci_pad, Cs_pad)),
    )(x_flat,
      wih_i, whh_i, b_i, wout_i, bout_i,
      wih_se, wih_si, whh_s, b_s, wout_s, bout_s)

    return (intent_flat[:, :Ci].reshape(B, T, Ci),
            slot_flat[:, :Cs].reshape(B, T, Cs))


def init_lstm_decoder_params(key, in_dim, hidden_dim, out_dim):
    """nn.LSTM + nn.Linear style init (uniform +-1/sqrt(H)).  Gate bias is stored
    pre-folded as b = b_ih + b_hh (sum the two PyTorch biases when porting)."""
    k1, k2, k3, k4, k5 = jax.random.split(key, 5)
    s = 1.0 / jnp.sqrt(jnp.float32(hidden_dim))
    return dict(
        w_ih=jax.random.uniform(k1, (in_dim, 4 * hidden_dim), jnp.float32, -s, s),
        w_hh=jax.random.uniform(k2, (hidden_dim, 4 * hidden_dim), jnp.float32, -s, s),
        b=jax.random.uniform(k3, (1, 4 * hidden_dim), jnp.float32, -s, s),
        w_out=jax.random.uniform(k4, (hidden_dim, out_dim), jnp.float32, -s, s),
        b_out=jax.random.uniform(k5, (1, out_dim), jnp.float32, -s, s),
    )


# ----------------------- pure-JAX reference (for checking) -----------------------
def _ref_lstm_decoder(x, p, hidden_dim):
    H = hidden_dim
    hp = lax.Precision.HIGHEST

    def cell(carry, x_t):
        h, c = carry
        gates = (jnp.dot(x_t, p["w_ih"], precision=hp)
                 + jnp.dot(h, p["w_hh"], precision=hp) + p["b"][0])
        i = jax.nn.sigmoid(gates[:, 0:H])
        f = jax.nn.sigmoid(gates[:, H:2 * H])
        g = jnp.tanh(gates[:, 2 * H:3 * H])
        o = jax.nn.sigmoid(gates[:, 3 * H:4 * H])
        c = f * c + i * g
        h = o * jnp.tanh(c)
        return (h, c), h

    B = x.shape[0]
    h0 = jnp.zeros((B, H), jnp.float32)
    _, hs = lax.scan(cell, (h0, h0), jnp.transpose(x, (1, 0, 2)))
    hs = jnp.transpose(hs, (1, 0, 2))                  # [B, T, H]
    return jnp.dot(hs, p["w_out"], precision=hp) + p["b_out"][0]


def _ref_forward(embedding, intent_params, slot_params, hidden_dim):
    intent = _ref_lstm_decoder(embedding, intent_params, hidden_dim)
    slot_in = jnp.concatenate([embedding, intent], axis=-1)
    slot = _ref_lstm_decoder(slot_in, slot_params, hidden_dim)
    return intent, slot


if __name__ == "__main__":
    key = jax.random.PRNGKey(0)
    B, T = 2, 8
    vocab = 100
    enc_hidden = 32        # stands in for config.hidden_size
    hidden_dim = 32
    num_intent = 8
    num_slot = 16

    keys = jax.random.split(key, 6)

    # Inputs mirroring forward(input_ids, att_mask, len_list).
    input_ids = jax.random.randint(keys[0], (B, T), 0, vocab)
    att_mask = jnp.ones((B, T), dtype=jnp.int32)
    len_list = jnp.full((B,), T, dtype=jnp.int32)      # full-length sequences

    # TODO(synk): XLM-RoBERTa contextual encoder replaced with a deterministic
    # embedding lookup (plain-JAX glue) producing `last_hidden_state`.
    emb_table = jax.random.normal(keys[1], (vocab, enc_hidden), jnp.float32) * 0.02
    embedding = emb_table[input_ids]                   # [B, T, enc_hidden]

    intent_params = init_lstm_decoder_params(keys[2], enc_hidden, hidden_dim, num_intent)
    slot_params = init_lstm_decoder_params(
        keys[3], enc_hidden + num_intent, hidden_dim, num_slot)

    intent_pred, slot_pred = stack_propagation_forward(
        embedding, intent_params, slot_params, hidden_dim=hidden_dim)
    jax.block_until_ready((intent_pred, slot_pred))

    assert intent_pred.shape == (B, T, num_intent)
    assert slot_pred.shape == (B, T, num_slot)
    assert jnp.isfinite(intent_pred).all() and jnp.isfinite(slot_pred).all()

    # Cross-check the fused kernel against a plain-JAX f32 reference of the same
    # math (kernel uses bf16 MXU operands, hence the slightly relaxed tolerance).
    intent_ref, slot_ref = _ref_forward(embedding, intent_params, slot_params, hidden_dim)
    assert jnp.allclose(intent_pred, intent_ref, atol=2e-2, rtol=2e-2), (
        float(jnp.max(jnp.abs(intent_pred - intent_ref))))
    assert jnp.allclose(slot_pred, slot_ref, atol=2e-2, rtol=2e-2), (
        float(jnp.max(jnp.abs(slot_pred - slot_ref))))

    print("KERNEL_OK")
</pallas_src>

<mosaic_0001>
module attributes {stable_mosaic.version = 11 : i64} {
  func.func @kernel(%arg0: i32, %arg1: memref<8x32xf32, #tpu.memory_space<vmem>>, %arg2: memref<32x128xbf16, #tpu.memory_space<vmem>>, %arg3: memref<32x128xbf16, #tpu.memory_space<vmem>>, %arg4: memref<1x128xf32, #tpu.memory_space<vmem>>, %arg5: memref<32x128xbf16, #tpu.memory_space<vmem>>, %arg6: memref<1x128xf32, #tpu.memory_space<vmem>>, %arg7: memref<32x128xbf16, #tpu.memory_space<vmem>>, %arg8: memref<128x128xbf16, #tpu.memory_space<vmem>>, %arg9: memref<32x128xbf16, #tpu.memory_space<vmem>>, %arg10: memref<1x128xf32, #tpu.memory_space<vmem>>, %arg11: memref<32x128xbf16, #tpu.memory_space<vmem>>, %arg12: memref<1x128xf32, #tpu.memory_space<vmem>>, %arg13: memref<8x128xf32, #tpu.memory_space<vmem>>, %arg14: memref<8x128xf32, #tpu.memory_space<vmem>>) attributes {dimension_semantics = [#tpu.dimension_semantics<parallel>], iteration_bounds = array<i64: 2>, scalar_prefetch = 0 : i64, scratch_operands = 0 : i64, tpu.core_type = #tpu.core_type<tc>, window_params = [{transform_indices = @transform_0, window_bounds = array<i64: 8, 32>}, {pipeline_mode = #tpu.pipeline_mode<synchronous>, transform_indices = @transform_1, window_bounds = array<i64: 32, 128>}, {pipeline_mode = #tpu.pipeline_mode<synchronous>, transform_indices = @transform_2, window_bounds = array<i64: 32, 128>}, {pipeline_mode = #tpu.pipeline_mode<synchronous>, transform_indices = @transform_3, window_bounds = array<i64: 1, 128>}, {pipeline_mode = #tpu.pipeline_mode<synchronous>, transform_indices = @transform_4, window_bounds = array<i64: 32, 128>}, {pipeline_mode = #tpu.pipeline_mode<synchronous>, transform_indices = @transform_5, window_bounds = array<i64: 1, 128>}, {pipeline_mode = #tpu.pipeline_mode<synchronous>, transform_indices = @transform_6, window_bounds = array<i64: 32, 128>}, {pipeline_mode = #tpu.pipeline_mode<synchronous>, transform_indices = @transform_7, window_bounds = array<i64: 128, 128>}, {pipeline_mode = #tpu.pipeline_mode<synchronous>, transform_indices = @transform_8, window_bounds = array<i64: 32, 128>}, {pipeline_mode = #tpu.pipeline_mode<synchronous>, transform_indices = @transform_9, window_bounds = array<i64: 1, 128>}, {pipeline_mode = #tpu.pipeline_mode<synchronous>, transform_indices = @transform_10, window_bounds = array<i64: 32, 128>}, {pipeline_mode = #tpu.pipeline_mode<synchronous>, transform_indices = @transform_11, window_bounds = array<i64: 1, 128>}, {transform_indices = @transform_12, window_bounds = array<i64: 8, 128>}, {transform_indices = @transform_13, window_bounds = array<i64: 8, 128>}]} {
    %c0 = arith.constant 0 : index
    %c0_0 = arith.constant 0 : index
    %0 = vector.load %arg1[%c0, %c0_0] : memref<8x32xf32, #tpu.memory_space<vmem>>, vector<8x32xf32>
    %1 = arith.truncf %0 : vector<8x32xf32> to vector<8x32xbf16>
    %c0_1 = arith.constant 0 : index
    %c0_2 = arith.constant 0 : index
    %2 = vector.load %arg2[%c0_1, %c0_2] : memref<32x128xbf16, #tpu.memory_space<vmem>>, vector<32x128xbf16>
    %cst = arith.constant dense<0.000000e+00> : vector<8x128xf32>
    %3 = tpu.matmul %1, %2, %cst {dimension_numbers = #tpu.dot_dimension_numbers<[1], [0], [0], [1], [0, 0, 1, 1], [], []>} : vector<8x32xbf16>, vector<32x128xbf16>, vector<8x128xf32> -> vector<8x128xf32>
    %c0_3 = arith.constant 0 : index
    %c0_4 = arith.constant 0 : index
    %4 = vector.load %arg4[%c0_3, %c0_4] : memref<1x128xf32, #tpu.memory_space<vmem>>, vector<1x128xf32>
    %5 = vector.broadcast %4 : vector<1x128xf32> to vector<8x128xf32>
    %6 = arith.addf %3, %5 : vector<8x128xf32>
    %c0_5 = arith.constant 0 : index
    %c0_6 = arith.constant 0 : index
    %7 = vector.load %arg7[%c0_5, %c0_6] : memref<32x128xbf16, #tpu.memory_space<vmem>>, vector<32x128xbf16>
    %cst_7 = arith.constant dense<0.000000e+00> : vector<8x128xf32>
    %8 = tpu.matmul %1, %7, %cst_7 {dimension_numbers = #tpu.dot_dimension_numbers<[1], [0], [0], [1], [0, 0, 1, 1], [], []>} : vector<8x32xbf16>, vector<32x128xbf16>, vector<8x128xf32> -> vector<8x128xf32>
    %c0_8 = arith.constant 0 : index
    %c0_9 = arith.constant 0 : index
    %9 = vector.load %arg10[%c0_8, %c0_9] : memref<1x128xf32, #tpu.memory_space<vmem>>, vector<1x128xf32>
    %10 = vector.broadcast %9 : vector<1x128xf32> to vector<8x128xf32>
    %11 = arith.addf %8, %10 : vector<8x128xf32>
    %c0_10 = arith.constant 0 : index
    %c0_11 = arith.constant 0 : index
    %12 = vector.load %arg3[%c0_10, %c0_11] : memref<32x128xbf16, #tpu.memory_space<vmem>>, vector<32x128xbf16>
    %cst_12 = arith.constant 0.000000e+00 : f32
    %13 = vector.broadcast %cst_12 : f32 to vector<1x32xf32>
    %cst_13 = arith.constant 0.000000e+00 : f32
    %14 = vector.broadcast %cst_13 : f32 to vector<1x32xf32>
    %15 = vector.extract_strided_slice %6 {offsets = [0, 0], sizes = [1, 128], strides = [1, 1]} : vector<8x128xf32> to vector<1x128xf32>
    %16 = arith.truncf %13 : vector<1x32xf32> to vector<1x32xbf16>
    %cst_14 = arith.constant dense<0.000000e+00> : vector<1x128xf32>
    %17 = tpu.matmul %16, %12, %cst_14 {dimension_numbers = #tpu.dot_dimension_numbers<[1], [0], [0], [1], [0, 0, 1, 1], [], []>} : vector<1x32xbf16>, vector<32x128xbf16>, vector<1x128xf32> -> vector<1x128xf32>
    %18 = arith.addf %15, %17 : vector<1x128xf32>
    %19 = arith.negf %18 : vector<1x128xf32>
    %20 = math.exp %19 : vector<1x128xf32>
    %cst_15 = arith.constant 1.000000e+00 : f32
    %21 = vector.broadcast %cst_15 : f32 to vector<1x128xf32>
    %22 = arith.addf %21, %20 : vector<1x128xf32>
    %23 = arith.divf %21, %22 : vector<1x128xf32>
    %24 = math.tanh %18 : vector<1x128xf32>
    %25 = vector.extract_strided_slice %23 {offsets = [0, 0], sizes = [1, 32], strides = [1, 1]} : vector<1x128xf32> to vector<1x32xf32>
    %26 = vector.extract_strided_slice %23 {offsets = [0, 32], sizes = [1, 32], strides = [1, 1]} : vector<1x128xf32> to vector<1x32xf32>
    %27 = vector.extract_strided_slice %24 {offsets = [0, 64], sizes = [1, 32], strides = [1, 1]} : vector<1x128xf32> to vector<1x32xf32>
    %28 = vector.extract_strided_slice %23 {offsets = [0, 96], sizes = [1, 32], strides = [1, 1]} : vector<1x128xf32> to vector<1x32xf32>
    %29 = arith.mulf %26, %14 : vector<1x32xf32>
    %30 = arith.mulf %25, %27 : vector<1x32xf32>
    %31 = arith.addf %29, %30 : vector<1x32xf32>
    %32 = math.tanh %31 : vector<1x32xf32>
    %33 = arith.mulf %28, %32 : vector<1x32xf32>
    %34 = vector.extract_strided_slice %6 {offsets = [1, 0], sizes = [1, 128], strides = [1, 1]} : vector<8x128xf32> to vector<1x128xf32>
    %35 = arith.truncf %33 : vector<1x32xf32> to vector<1x32xbf16>
    %cst_16 = arith.constant dense<0.000000e+00> : vector<1x128xf32>
    %36 = tpu.matmul %35, %12, %cst_16 {dimension_numbers = #tpu.dot_dimension_numbers<[1], [0], [0], [1], [0, 0, 1, 1], [], []>} : vector<1x32xbf16>, vector<32x128xbf16>, vector<1x128xf32> -> vector<1x128xf32>
    %37 = arith.addf %34, %36 : vector<1x128xf32>
    %38 = arith.negf %37 : vector<1x128xf32>
    %39 = math.exp %38 : vector<1x128xf32>
    %cst_17 = arith.constant 1.000000e+00 : f32
    %40 = vector.broadcast %cst_17 : f32 to vector<1x128xf32>
    %41 = arith.addf %40, %39 : vector<1x128xf32>
    %42 = arith.divf %40, %41 : vector<1x128xf32>
    %43 = math.tanh %37 : vector<1x128xf32>
    %44 = vector.extract_strided_slice %42 {offsets = [0, 0], sizes = [1, 32], strides = [1, 1]} : vector<1x128xf32> to vector<1x32xf32>
    %45 = vector.extract_strided_slice %42 {offsets = [0, 32], sizes = [1, 32], strides = [1, 1]} : vector<1x128xf32> to vector<1x32xf32>
    %46 = vector.extract_strided_slice %43 {offsets = [0, 64], sizes = [1, 32], strides = [1, 1]} : vector<1x128xf32> to vector<1x32xf32>
    %47 = vector.extract_strided_slice %42 {offsets = [0, 96], sizes = [1, 32], strides = [1, 1]} : vector<1x128xf32> to vector<1x32xf32>
    %48 = arith.mulf %45, %31 : vector<1x32xf32>
    %49 = arith.mulf %44, %46 : vector<1x32xf32>
    %50 = arith.addf %48, %49 : vector<1x32xf32>
    %51 = math.tanh %50 : vector<1x32xf32>
    %52 = arith.mulf %47, %51 : vector<1x32xf32>
    %53 = vector.extract_strided_slice %6 {offsets = [2, 0], sizes = [1, 128], strides = [1, 1]} : vector<8x128xf32> to vector<1x128xf32>
    %54 = arith.truncf %52 : vector<1x32xf32> to vector<1x32xbf16>
    %cst_18 = arith.constant dense<0.000000e+00> : vector<1x128xf32>
    %55 = tpu.matmul %54, %12, %cst_18 {dimension_numbers = #tpu.dot_dimension_numbers<[1], [0], [0], [1], [0, 0, 1, 1], [], []>} : vector<1x32xbf16>, vector<32x128xbf16>, vector<1x128xf32> -> vector<1x128xf32>
    %56 = arith.addf %53, %55 : vector<1x128xf32>
    %57 = arith.negf %56 : vector<1x128xf32>
    %58 = math.exp %57 : vector<1x128xf32>
    %cst_19 = arith.constant 1.000000e+00 : f32
    %59 = vector.broadcast %cst_19 : f32 to vector<1x128xf32>
    %60 = arith.addf %59, %58 : vector<1x128xf32>
    %61 = arith.divf %59, %60 : vector<1x128xf32>
    %62 = math.tanh %56 : vector<1x128xf32>
    %63 = vector.extract_strided_slice %61 {offsets = [0, 0], sizes = [1, 32], strides = [1, 1]} : vector<1x128xf32> to vector<1x32xf32>
    %64 = vector.extract_strided_slice %61 {offsets = [0, 32], sizes = [1, 32], strides = [1, 1]} : vector<1x128xf32> to vector<1x32xf32>
    %65 = vector.extract_strided_slice %62 {offsets = [0, 64], sizes = [1, 32], strides = [1, 1]} : vector<1x128xf32> to vector<1x32xf32>
    %66 = vector.extract_strided_slice %61 {offsets = [0, 96], sizes = [1, 32], strides = [1, 1]} : vector<1x128xf32> to vector<1x32xf32>
    %67 = arith.mulf %64, %50 : vector<1x32xf32>
    %68 = arith.mulf %63, %65 : vector<1x32xf32>
    %69 = arith.addf %67, %68 : vector<1x32xf32>
    %70 = math.tanh %69 : vector<1x32xf32>
    %71 = arith.mulf %66, %70 : vector<1x32xf32>
    %72 = vector.extract_strided_slice %6 {offsets = [3, 0], sizes = [1, 128], strides = [1, 1]} : vector<8x128xf32> to vector<1x128xf32>
    %73 = arith.truncf %71 : vector<1x32xf32> to vector<1x32xbf16>
    %cst_20 = arith.constant dense<0.000000e+00> : vector<1x128xf32>
    %74 = tpu.matmul %73, %12, %cst_20 {dimension_numbers = #tpu.dot_dimension_numbers<[1], [0], [0], [1], [0, 0, 1, 1], [], []>} : vector<1x32xbf16>, vector<32x128xbf16>, vector<1x128xf32> -> vector<1x128xf32>
    %75 = arith.addf %72, %74 : vector<1x128xf32>
    %76 = arith.negf %75 : vector<1x128xf32>
    %77 = math.exp %76 : vector<1x128xf32>
    %cst_21 = arith.constant 1.000000e+00 : f32
    %78 = vector.broadcast %cst_21 : f32 to vector<1x128xf32>
    %79 = arith.addf %78, %77 : vector<1x128xf32>
    %80 = arith.divf %78, %79 : vector<1x128xf32>
    %81 = math.tanh %75 : vector<1x128xf32>
    %82 = vector.extract_strided_slice %80 {offsets = [0, 0], sizes = [1, 32], strides = [1, 1]} : vector<1x128xf32> to vector<1x32xf32>
    %83 = vector.extract_strided_slice %80 {offsets = [0, 32], sizes = [1, 32], strides = [1, 1]} : vector<1x128xf32> to vector<1x32xf32>
    %84 = vector.extract_strided_slice %81 {offsets = [0, 64], sizes = [1, 32], strides = [1, 1]} : vector<1x128xf32> to vector<1x32xf32>
    %85 = vector.extract_strided_slice %80 {offsets = [0, 96], sizes = [1, 32], strides = [1, 1]} : vector<1x128xf32> to vector<1x32xf32>
    %86 = arith.mulf %83, %69 : vector<1x32xf32>
    %87 = arith.mulf %82, %84 : vector<1x32xf32>
    %88 = arith.addf %86, %87 : vector<1x32xf32>
    %89 = math.tanh %88 : vector<1x32xf32>
    %90 = arith.mulf %85, %89 : vector<1x32xf32>
    %91 = vector.extract_strided_slice %6 {offsets = [4, 0], sizes = [1, 128], strides = [1, 1]} : vector<8x128xf32> to vector<1x128xf32>
    %92 = arith.truncf %90 : vector<1x32xf32> to vector<1x32xbf16>
    %cst_22 = arith.constant dense<0.000000e+00> : vector<1x128xf32>
    %93 = tpu.matmul %92, %12, %cst_22 {dimension_numbers = #tpu.dot_dimension_numbers<[1], [0], [0], [1], [0, 0, 1, 1], [], []>} : vector<1x32xbf16>, vector<32x128xbf16>, vector<1x128xf32> -> vector<1x128xf32>
    %94 = arith.addf %91, %93 : vector<1x128xf32>
    %95 = arith.negf %94 : vector<1x128xf32>
    %96 = math.exp %95 : vector<1x128xf32>
    %cst_23 = arith.constant 1.000000e+00 : f32
    %97 = vector.broadcast %cst_23 : f32 to vector<1x128xf32>
    %98 = arith.addf %97, %96 : vector<1x128xf32>
    %99 = arith.divf %97, %98 : vector<1x128xf32>
    %100 = math.tanh %94 : vector<1x128xf32>
    %101 = vector.extract_strided_slice %99 {offsets = [0, 0], sizes = [1, 32], strides = [1, 1]} : vector<1x128xf32> to vector<1x32xf32>
    %102 = vector.extract_strided_slice %99 {offsets = [0, 32], sizes = [1, 32], strides = [1, 1]} : vector<1x128xf32> to vector<1x32xf32>
    %103 = vector.extract_strided_slice %100 {offsets = [0, 64], sizes = [1, 32], strides = [1, 1]} : vector<1x128xf32> to vector<1x32xf32>
    %104 = vector.extract_strided_slice %99 {offsets = [0, 96], sizes = [1, 32], strides = [1, 1]} : vector<1x128xf32> to vector<1x32xf32>
    %105 = arith.mulf %102, %88 : vector<1x32xf32>
    %106 = arith.mulf %101, %103 : vector<1x32xf32>
    %107 = arith.addf %105, %106 : vector<1x32xf32>
    %108 = math.tanh %107 : vector<1x32xf32>
    %109 = arith.mulf %104, %108 : vector<1x32xf32>
    %110 = vector.extract_strided_slice %6 {offsets = [5, 0], sizes = [1, 128], strides = [1, 1]} : vector<8x128xf32> to vector<1x128xf32>
    %111 = arith.truncf %109 : vector<1x32xf32> to vector<1x32xbf16>
    %cst_24 = arith.constant dense<0.000000e+00> : vector<1x128xf32>
    %112 = tpu.matmul %111, %12, %cst_24 {dimension_numbers = #tpu.dot_dimension_numbers<[1], [0], [0], [1], [0, 0, 1, 1], [], []>} : vector<1x32xbf16>, vector<32x128xbf16>, vector<1x128xf32> -> vector<1x128xf32>
    %113 = arith.addf %110, %112 : vector<1x128xf32>
    %114 = arith.negf %113 : vector<1x128xf32>
    %115 = math.exp %114 : vector<1x128xf32>
    %cst_25 = arith.constant 1.000000e+00 : f32
    %116 = vector.broadcast %cst_25 : f32 to vector<1x128xf32>
    %117 = arith.addf %116, %115 : vector<1x128xf32>
    %118 = arith.divf %116, %117 : vector<1x128xf32>
    %119 = math.tanh %113 : vector<1x128xf32>
    %120 = vector.extract_strided_slice %118 {offsets = [0, 0], sizes = [1, 32], strides = [1, 1]} : vector<1x128xf32> to vector<1x32xf32>
    %121 = vector.extract_strided_slice %118 {offsets = [0, 32], sizes = [1, 32], strides = [1, 1]} : vector<1x128xf32> to vector<1x32xf32>
    %122 = vector.extract_strided_slice %119 {offsets = [0, 64], sizes = [1, 32], strides = [1, 1]} : vector<1x128xf32> to vector<1x32xf32>
    %123 = vector.extract_strided_slice %118 {offsets = [0, 96], sizes = [1, 32], strides = [1, 1]} : vector<1x128xf32> to vector<1x32xf32>
    %124 = arith.mulf %121, %107 : vector<1x32xf32>
    %125 = arith.mulf %120, %122 : vector<1x32xf32>
    %126 = arith.addf %124, %125 : vector<1x32xf32>
    %127 = math.tanh %126 : vector<1x32xf32>
    %128 = arith.mulf %123, %127 : vector<1x32xf32>
    %129 = vector.extract_strided_slice %6 {offsets = [6, 0], sizes = [1, 128], strides = [1, 1]} : vector<8x128xf32> to vector<1x128xf32>
    %130 = arith.truncf %128 : vector<1x32xf32> to vector<1x32xbf16>
    %cst_26 = arith.constant dense<0.000000e+00> : vector<1x128xf32>
    %131 = tpu.matmul %130, %12, %cst_26 {dimension_numbers = #tpu.dot_dimension_numbers<[1], [0], [0], [1], [0, 0, 1, 1], [], []>} : vector<1x32xbf16>, vector<32x128xbf16>, vector<1x128xf32> -> vector<1x128xf32>
    %132 = arith.addf %129, %131 : vector<1x128xf32>
    %133 = arith.negf %132 : vector<1x128xf32>
    %134 = math.exp %133 : vector<1x128xf32>
    %cst_27 = arith.constant 1.000000e+00 : f32
    %135 = vector.broadcast %cst_27 : f32 to vector<1x128xf32>
    %136 = arith.addf %135, %134 : vector<1x128xf32>
    %137 = arith.divf %135, %136 : vector<1x128xf32>
    %138 = math.tanh %132 : vector<1x128xf32>
    %139 = vector.extract_strided_slice %137 {offsets = [0, 0], sizes = [1, 32], strides = [1, 1]} : vector<1x128xf32> to vector<1x32xf32>
    %140 = vector.extract_strided_slice %137 {offsets = [0, 32], sizes = [1, 32], strides = [1, 1]} : vector<1x128xf32> to vector<1x32xf32>
    %141 = vector.extract_strided_slice %138 {offsets = [0, 64], sizes = [1, 32], strides = [1, 1]} : vector<1x128xf32> to vector<1x32xf32>
    %142 = vector.extract_strided_slice %137 {offsets = [0, 96], sizes = [1, 32], strides = [1, 1]} : vector<1x128xf32> to vector<1x32xf32>
    %143 = arith.mulf %140, %126 : vector<1x32xf32>
    %144 = arith.mulf %139, %141 : vector<1x32xf32>
    %145 = arith.addf %143, %144 : vector<1x32xf32>
    %146 = math.tanh %145 : vector<1x32xf32>
    %147 = arith.mulf %142, %146 : vector<1x32xf32>
    %148 = vector.extract_strided_slice %6 {offsets = [7, 0], sizes = [1, 128], strides = [1, 1]} : vector<8x128xf32> to vector<1x128xf32>
    %149 = arith.truncf %147 : vector<1x32xf32> to vector<1x32xbf16>
    %cst_28 = arith.constant dense<0.000000e+00> : vector<1x128xf32>
    %150 = tpu.matmul %149, %12, %cst_28 {dimension_numbers = #tpu.dot_dimension_numbers<[1], [0], [0], [1], [0, 0, 1, 1], [], []>} : vector<1x32xbf16>, vector<32x128xbf16>, vector<1x128xf32> -> vector<1x128xf32>
    %151 = arith.addf %148, %150 : vector<1x128xf32>
    %152 = arith.negf %151 : vector<1x128xf32>
    %153 = math.exp %152 : vector<1x128xf32>
    %cst_29 = arith.constant 1.000000e+00 : f32
    %154 = vector.broadcast %cst_29 : f32 to vector<1x128xf32>
    %155 = arith.addf %154, %153 : vector<1x128xf32>
    %156 = arith.divf %154, %155 : vector<1x128xf32>
    %157 = math.tanh %151 : vector<1x128xf32>
    %158 = vector.extract_strided_slice %156 {offsets = [0, 0], sizes = [1, 32], strides = [1, 1]} : vector<1x128xf32> to vector<1x32xf32>
    %159 = vector.extract_strided_slice %156 {offsets = [0, 32], sizes = [1, 32], strides = [1, 1]} : vector<1x128xf32> to vector<1x32xf32>
    %160 = vector.extract_strided_slice %157 {offsets = [0, 64], sizes = [1, 32], strides = [1, 1]} : vector<1x128xf32> to vector<1x32xf32>
    %161 = vector.extract_strided_slice %156 {offsets = [0, 96], sizes = [1, 32], strides = [1, 1]} : vector<1x128xf32> to vector<1x32xf32>
    %162 = arith.mulf %159, %145 : vector<1x32xf32>
    %163 = arith.mulf %158, %160 : vector<1x32xf32>
    %164 = arith.addf %162, %163 : vector<1x32xf32>
    %165 = math.tanh %164 : vector<1x32xf32>
    %166 = arith.mulf %161, %165 : vector<1x32xf32>
    %167 = tpu.concatenate %33, %52, %71, %90, %109, %128, %147, %166 in 0 : vector<1x32xf32>, vector<1x32xf32>, vector<1x32xf32>, vector<1x32xf32>, vector<1x32xf32>, vector<1x32xf32>, vector<1x32xf32>, vector<1x32xf32> -> vector<8x32xf32>
    %168 = arith.truncf %167 : vector<8x32xf32> to vector<8x32xbf16>
    %c0_30 = arith.constant 0 : index
    %c0_31 = arith.constant 0 : index
    %169 = vector.load %arg5[%c0_30, %c0_31] : memref<32x128xbf16, #tpu.memory_space<vmem>>, vector<32x128xbf16>
    %cst_32 = arith.constant dense<0.000000e+00> : vector<8x128xf32>
    %170 = tpu.matmul %168, %169, %cst_32 {dimension_numbers = #tpu.dot_dimension_numbers<[1], [0], [0], [1], [0, 0, 1, 1], [], []>} : vector<8x32xbf16>, vector<32x128xbf16>, vector<8x128xf32> -> vector<8x128xf32>
    %c0_33 = arith.constant 0 : index
    %c0_34 = arith.constant 0 : index
    %171 = vector.load %arg6[%c0_33, %c0_34] : memref<1x128xf32, #tpu.memory_space<vmem>>, vector<1x128xf32>
    %172 = vector.broadcast %171 : vector<1x128xf32> to vector<8x128xf32>
    %173 = arith.addf %170, %172 : vector<8x128xf32>
    %c0_35 = arith.constant 0 : index
    %c0_36 = arith.constant 0 : index
    %174 = vector.load %arg13[%c0_35, %c0_36] : memref<8x128xf32, #tpu.memory_space<vmem>>, vector<8x128xf32>
    tpu.vector_store %arg13[%c0_35, %c0_36], %173 {strides = array<i32>} : memref<8x128xf32, #tpu.memory_space<vmem>>, vector<8x128xf32>,
    %175 = arith.truncf %173 : vector<8x128xf32> to vector<8x128xbf16>
    %c0_37 = arith.constant 0 : index
    %c0_38 = arith.constant 0 : index
    %176 = vector.load %arg8[%c0_37, %c0_38] : memref<128x128xbf16, #tpu.memory_space<vmem>>, vector<128x128xbf16>
    %cst_39 = arith.constant dense<0.000000e+00> : vector<8x128xf32>
    %177 = tpu.matmul %175, %176, %cst_39 {dimension_numbers = #tpu.dot_dimension_numbers<[1], [0], [0], [1], [0, 0, 1, 1], [], []>} : vector<8x128xbf16>, vector<128x128xbf16>, vector<8x128xf32> -> vector<8x128xf32>
    %178 = arith.addf %11, %177 : vector<8x128xf32>
    %c0_40 = arith.constant 0 : index
    %c0_41 = arith.constant 0 : index
    %179 = vector.load %arg9[%c0_40, %c0_41] : memref<32x128xbf16, #tpu.memory_space<vmem>>, vector<32x128xbf16>
    %cst_42 = arith.constant 0.000000e+00 : f32
    %180 = vector.broadcast %cst_42 : f32 to vector<1x32xf32>
    %cst_43 = arith.constant 0.000000e+00 : f32
    %181 = vector.broadcast %cst_43 : f32 to vector<1x32xf32>
    %182 = vector.extract_strided_slice %178 {offsets = [0, 0], sizes = [1, 128], strides = [1, 1]} : vector<8x128xf32> to vector<1x128xf32>
    %183 = arith.truncf %180 : vector<1x32xf32> to vector<1x32xbf16>
    %cst_44 = arith.constant dense<0.000000e+00> : vector<1x128xf32>
    %184 = tpu.matmul %183, %179, %cst_44 {dimension_numbers = #tpu.dot_dimension_numbers<[1], [0], [0], [1], [0, 0, 1, 1], [], []>} : vector<1x32xbf16>, vector<32x128xbf16>, vector<1x128xf32> -> vector<1x128xf32>
    %185 = arith.addf %182, %184 : vector<1x128xf32>
    %186 = arith.negf %185 : vector<1x128xf32>
    %187 = math.exp %186 : vector<1x128xf32>
    %cst_45 = arith.constant 1.000000e+00 : f32
    %188 = vector.broadcast %cst_45 : f32 to vector<1x128xf32>
    %189 = arith.addf %188, %187 : vector<1x128xf32>
    %190 = arith.divf %188, %189 : vector<1x128xf32>
    %191 = math.tanh %185 : vector<1x128xf32>
    %192 = vector.extract_strided_slice %190 {offsets = [0, 0], sizes = [1, 32], strides = [1, 1]} : vector<1x128xf32> to vector<1x32xf32>
    %193 = vector.extract_strided_slice %190 {offsets = [0, 32], sizes = [1, 32], strides = [1, 1]} : vector<1x128xf32> to vector<1x32xf32>
    %194 = vector.extract_strided_slice %191 {offsets = [0, 64], sizes = [1, 32], strides = [1, 1]} : vector<1x128xf32> to vector<1x32xf32>
    %195 = vector.extract_strided_slice %190 {offsets = [0, 96], sizes = [1, 32], strides = [1, 1]} : vector<1x128xf32> to vector<1x32xf32>
    %196 = arith.mulf %193, %181 : vector<1x32xf32>
    %197 = arith.mulf %192, %194 : vector<1x32xf32>
    %198 = arith.addf %196, %197 : vector<1x32xf32>
    %199 = math.tanh %198 : vector<1x32xf32>
    %200 = arith.mulf %195, %199 : vector<1x32xf32>
    %201 = vector.extract_strided_slice %178 {offsets = [1, 0], sizes = [1, 128], strides = [1, 1]} : vector<8x128xf32> to vector<1x128xf32>
    %202 = arith.truncf %200 : vector<1x32xf32> to vector<1x32xbf16>
    %cst_46 = arith.constant dense<0.000000e+00> : vector<1x128xf32>
    %203 = tpu.matmul %202, %179, %cst_46 {dimension_numbers = #tpu.dot_dimension_numbers<[1], [0], [0], [1], [0, 0, 1, 1], [], []>} : vector<1x32xbf16>, vector<32x128xbf16>, vector<1x128xf32> -> vector<1x128xf32>
    %204 = arith.addf %201, %203 : vector<1x128xf32>
    %205 = arith.negf %204 : vector<1x128xf32>
    %206 = math.exp %205 : vector<1x128xf32>
    %cst_47 = arith.constant 1.000000e+00 : f32
    %207 = vector.broadcast %cst_47 : f32 to vector<1x128xf32>
    %208 = arith.addf %207, %206 : vector<1x128xf32>
    %209 = arith.divf %207, %208 : vector<1x128xf32>
    %210 = math.tanh %204 : vector<1x128xf32>
    %211 = vector.extract_strided_slice %209 {offsets = [0, 0], sizes = [1, 32], strides = [1, 1]} : vector<1x128xf32> to vector<1x32xf32>
    %212 = vector.extract_strided_slice %209 {offsets = [0, 32], sizes = [1, 32], strides = [1, 1]} : vector<1x128xf32> to vector<1x32xf32>
    %213 = vector.extract_strided_slice %210 {offsets = [0, 64], sizes = [1, 32], strides = [1, 1]} : vector<1x128xf32> to vector<1x32xf32>
    %214 = vector.extract_strided_slice %209 {offsets = [0, 96], sizes = [1, 32], strides = [1, 1]} : vector<1x128xf32> to vector<1x32xf32>
    %215 = arith.mulf %212, %198 : vector<1x32xf32>
    %216 = arith.mulf %211, %213 : vector<1x32xf32>
    %217 = arith.addf %215, %216 : vector<1x32xf32>
    %218 = math.tanh %217 : vector<1x32xf32>
    %219 = arith.mulf %214, %218 : vector<1x32xf32>
    %220 = vector.extract_strided_slice %178 {offsets = [2, 0], sizes = [1, 128], strides = [1, 1]} : vector<8x128xf32> to vector<1x128xf32>
    %221 = arith.truncf %219 : vector<1x32xf32> to vector<1x32xbf16>
    %cst_48 = arith.constant dense<0.000000e+00> : vector<1x128xf32>
    %222 = tpu.matmul %221, %179, %cst_48 {dimension_numbers = #tpu.dot_dimension_numbers<[1], [0], [0], [1], [0, 0, 1, 1], [], []>} : vector<1x32xbf16>, vector<32x128xbf16>, vector<1x128xf32> -> vector<1x128xf32>
    %223 = arith.addf %220, %222 : vector<1x128xf32>
    %224 = arith.negf %223 : vector<1x128xf32>
    %225 = math.exp %224 : vector<1x128xf32>
    %cst_49 = arith.constant 1.000000e+00 : f32
    %226 = vector.broadcast %cst_49 : f32 to vector<1x128xf32>
    %227 = arith.addf %226, %225 : vector<1x128xf32>
    %228 = arith.divf %226, %227 : vector<1x128xf32>
    %229 = math.tanh %223 : vector<1x128xf32>
    %230 = vector.extract_strided_slice %228 {offsets = [0, 0], sizes = [1, 32], strides = [1, 1]} : vector<1x128xf32> to vector<1x32xf32>
    %231 = vector.extract_strided_slice %228 {offsets = [0, 32], sizes = [1, 32], strides = [1, 1]} : vector<1x128xf32> to vector<1x32xf32>
    %232 = vector.extract_strided_slice %229 {offsets = [0, 64], sizes = [1, 32], strides = [1, 1]} : vector<1x128xf32> to vector<1x32xf32>
    %233 = vector.extract_strided_slice %228 {offsets = [0, 96], sizes = [1, 32], strides = [1, 1]} : vector<1x128xf32> to vector<1x32xf32>
    %234 = arith.mulf %231, %217 : vector<1x32xf32>
    %235 = arith.mulf %230, %232 : vector<1x32xf32>
    %236 = arith.addf %234, %235 : vector<1x32xf32>
    %237 = math.tanh %236 : vector<1x32xf32>
    %238 = arith.mulf %233, %237 : vector<1x32xf32>
    %239 = vector.extract_strided_slice %178 {offsets = [3, 0], sizes = [1, 128], strides = [1, 1]} : vector<8x128xf32> to vector<1x128xf32>
    %240 = arith.truncf %238 : vector<1x32xf32> to vector<1x32xbf16>
    %cst_50 = arith.constant dense<0.000000e+00> : vector<1x128xf32>
    %241 = tpu.matmul %240, %179, %cst_50 {dimension_numbers = #tpu.dot_dimension_numbers<[1], [0], [0], [1], [0, 0, 1, 1], [], []>} : vector<1x32xbf16>, vector<32x128xbf16>, vector<1x128xf32> -> vector<1x128xf32>
    %242 = arith.addf %239, %241 : vector<1x128xf32>
    %243 = arith.negf %242 : vector<1x128xf32>
    %244 = math.exp %243 : vector<1x128xf32>
    %cst_51 = arith.constant 1.000000e+00 : f32
    %245 = vector.broadcast %cst_51 : f32 to vector<1x128xf32>
    %246 = arith.addf %245, %244 : vector<1x128xf32>
    %247 = arith.divf %245, %246 : vector<1x128xf32>
    %248 = math.tanh %242 : vector<1x128xf32>
    %249 = vector.extract_strided_slice %247 {offsets = [0, 0], sizes = [1, 32], strides = [1, 1]} : vector<1x128xf32> to vector<1x32xf32>
    %250 = vector.extract_strided_slice %247 {offsets = [0, 32], sizes = [1, 32], strides = [1, 1]} : vector<1x128xf32> to vector<1x32xf32>
    %251 = vector.extract_strided_slice %248 {offsets = [0, 64], sizes = [1, 32], strides = [1, 1]} : vector<1x128xf32> to vector<1x32xf32>
    %252 = vector.extract_strided_slice %247 {offsets = [0, 96], sizes = [1, 32], strides = [1, 1]} : vector<1x128xf32> to vector<1x32xf32>
    %253 = arith.mulf %250, %236 : vector<1x32xf32>
    %254 = arith.mulf %249, %251 : vector<1x32xf32>
    %255 = arith.addf %253, %254 : vector<1x32xf32>
    %256 = math.tanh %255 : vector<1x32xf32>
    %257 = arith.mulf %252, %256 : vector<1x32xf32>
    %258 = vector.extract_strided_slice %178 {offsets = [4, 0], sizes = [1, 128], strides = [1, 1]} : vector<8x128xf32> to vector<1x128xf32>
    %259 = arith.truncf %257 : vector<1x32xf32> to vector<1x32xbf16>
    %cst_52 = arith.constant dense<0.000000e+00> : vector<1x128xf32>
    %260 = tpu.matmul %259, %179, %cst_52 {dimension_numbers = #tpu.dot_dimension_numbers<[1], [0], [0], [1], [0, 0, 1, 1], [], []>} : vector<1x32xbf16>, vector<32x128xbf16>, vector<1x128xf32> -> vector<1x128xf32>
    %261 = arith.addf %258, %260 : vector<1x128xf32>
    %262 = arith.negf %261 : vector<1x128xf32>
    %263 = math.exp %262 : vector<1x128xf32>
    %cst_53 = arith.constant 1.000000e+00 : f32
    %264 = vector.broadcast %cst_53 : f32 to vector<1x128xf32>
    %265 = arith.addf %264, %263 : vector<1x128xf32>
    %266 = arith.divf %264, %265 : vector<1x128xf32>
    %267 = math.tanh %261 : vector<1x128xf32>
    %268 = vector.extract_strided_slice %266 {offsets = [0, 0], sizes = [1, 32], strides = [1, 1]} : vector<1x128xf32> to vector<1x32xf32>
    %269 = vector.extract_strided_slice %266 {offsets = [0, 32], sizes = [1, 32], strides = [1, 1]} : vector<1x128xf32> to vector<1x32xf32>
    %270 = vector.extract_strided_slice %267 {offsets = [0, 64], sizes = [1, 32], strides = [1, 1]} : vector<1x128xf32> to vector<1x32xf32>
    %271 = vector.extract_strided_slice %266 {offsets = [0, 96], sizes = [1, 32], strides = [1, 1]} : vector<1x128xf32> to vector<1x32xf32>
    %272 = arith.mulf %269, %255 : vector<1x32xf32>
    %273 = arith.mulf %268, %270 : vector<1x32xf32>
    %274 = arith.addf %272, %273 : vector<1x32xf32>
    %275 = math.tanh %274 : vector<1x32xf32>
    %276 = arith.mulf %271, %275 : vector<1x32xf32>
    %277 = vector.extract_strided_slice %178 {offsets = [5, 0], sizes = [1, 128], strides = [1, 1]} : vector<8x128xf32> to vector<1x128xf32>
    %278 = arith.truncf %276 : vector<1x32xf32> to vector<1x32xbf16>
    %cst_54 = arith.constant dense<0.000000e+00> : vector<1x128xf32>
    %279 = tpu.matmul %278, %179, %cst_54 {dimension_numbers = #tpu.dot_dimension_numbers<[1], [0], [0], [1], [0, 0, 1, 1], [], []>} : vector<1x32xbf16>, vector<32x128xbf16>, vector<1x128xf32> -> vector<1x128xf32>
    %280 = arith.addf %277, %279 : vector<1x128xf32>
    %281 = arith.negf %280 : vector<1x128xf32>
    %282 = math.exp %281 : vector<1x128xf32>
    %cst_55 = arith.constant 1.000000e+00 : f32
    %283 = vector.broadcast %cst_55 : f32 to vector<1x128xf32>
    %284 = arith.addf %283, %282 : vector<1x128xf32>
    %285 = arith.divf %283, %284 : vector<1x128xf32>
    %286 = math.tanh %280 : vector<1x128xf32>
    %287 = vector.extract_strided_slice %285 {offsets = [0, 0], sizes = [1, 32], strides = [1, 1]} : vector<1x128xf32> to vector<1x32xf32>
    %288 = vector.extract_strided_slice %285 {offsets = [0, 32], sizes = [1, 32], strides = [1, 1]} : vector<1x128xf32> to vector<1x32xf32>
    %289 = vector.extract_strided_slice %286 {offsets = [0, 64], sizes = [1, 32], strides = [1, 1]} : vector<1x128xf32> to vector<1x32xf32>
    %290 = vector.extract_strided_slice %285 {offsets = [0, 96], sizes = [1, 32], strides = [1, 1]} : vector<1x128xf32> to vector<1x32xf32>
    %291 = arith.mulf %288, %274 : vector<1x32xf32>
    %292 = arith.mulf %287, %289 : vector<1x32xf32>
    %293 = arith.addf %291, %292 : vector<1x32xf32>
    %294 = math.tanh %293 : vector<1x32xf32>
    %295 = arith.mulf %290, %294 : vector<1x32xf32>
    %296 = vector.extract_strided_slice %178 {offsets = [6, 0], sizes = [1, 128], strides = [1, 1]} : vector<8x128xf32> to vector<1x128xf32>
    %297 = arith.truncf %295 : vector<1x32xf32> to vector<1x32xbf16>
    %cst_56 = arith.constant dense<0.000000e+00> : vector<1x128xf32>
    %298 = tpu.matmul %297, %179, %cst_56 {dimension_numbers = #tpu.dot_dimension_numbers<[1], [0], [0], [1], [0, 0, 1, 1], [], []>} : vector<1x32xbf16>, vector<32x128xbf16>, vector<1x128xf32> -> vector<1x128xf32>
    %299 = arith.addf %296, %298 : vector<1x128xf32>
    %300 = arith.negf %299 : vector<1x128xf32>
    %301 = math.exp %300 : vector<1x128xf32>
    %cst_57 = arith.constant 1.000000e+00 : f32
    %302 = vector.broadcast %cst_57 : f32 to vector<1x128xf32>
    %303 = arith.addf %302, %301 : vector<1x128xf32>
    %304 = arith.divf %302, %303 : vector<1x128xf32>
    %305 = math.tanh %299 : vector<1x128xf32>
    %306 = vector.extract_strided_slice %304 {offsets = [0, 0], sizes = [1, 32], strides = [1, 1]} : vector<1x128xf32> to vector<1x32xf32>
    %307 = vector.extract_strided_slice %304 {offsets = [0, 32], sizes = [1, 32], strides = [1, 1]} : vector<1x128xf32> to vector<1x32xf32>
    %308 = vector.extract_strided_slice %305 {offsets = [0, 64], sizes = [1, 32], strides = [1, 1]} : vector<1x128xf32> to vector<1x32xf32>
    %309 = vector.extract_strided_slice %304 {offsets = [0, 96], sizes = [1, 32], strides = [1, 1]} : vector<1x128xf32> to vector<1x32xf32>
    %310 = arith.mulf %307, %293 : vector<1x32xf32>
    %311 = arith.mulf %306, %308 : vector<1x32xf32>
    %312 = arith.addf %310, %311 : vector<1x32xf32>
    %313 = math.tanh %312 : vector<1x32xf32>
    %314 = arith.mulf %309, %313 : vector<1x32xf32>
    %315 = vector.extract_strided_slice %178 {offsets = [7, 0], sizes = [1, 128], strides = [1, 1]} : vector<8x128xf32> to vector<1x128xf32>
    %316 = arith.truncf %314 : vector<1x32xf32> to vector<1x32xbf16>
    %cst_58 = arith.constant dense<0.000000e+00> : vector<1x128xf32>
    %317 = tpu.matmul %316, %179, %cst_58 {dimension_numbers = #tpu.dot_dimension_numbers<[1], [0], [0], [1], [0, 0, 1, 1], [], []>} : vector<1x32xbf16>, vector<32x128xbf16>, vector<1x128xf32> -> vector<1x128xf32>
    %318 = arith.addf %315, %317 : vector<1x128xf32>
    %319 = arith.negf %318 : vector<1x128xf32>
    %320 = math.exp %319 : vector<1x128xf32>
    %cst_59 = arith.constant 1.000000e+00 : f32
    %321 = vector.broadcast %cst_59 : f32 to vector<1x128xf32>
    %322 = arith.addf %321, %320 : vector<1x128xf32>
    %323 = arith.divf %321, %322 : vector<1x128xf32>
    %324 = math.tanh %318 : vector<1x128xf32>
    %325 = vector.extract_strided_slice %323 {offsets = [0, 0], sizes = [1, 32], strides = [1, 1]} : vector<1x128xf32> to vector<1x32xf32>
    %326 = vector.extract_strided_slice %323 {offsets = [0, 32], sizes = [1, 32], strides = [1, 1]} : vector<1x128xf32> to vector<1x32xf32>
    %327 = vector.extract_strided_slice %324 {offsets = [0, 64], sizes = [1, 32], strides = [1, 1]} : vector<1x128xf32> to vector<1x32xf32>
    %328 = vector.extract_strided_slice %323 {offsets = [0, 96], sizes = [1, 32], strides = [1, 1]} : vector<1x128xf32> to vector<1x32xf32>
    %329 = arith.mulf %326, %312 : vector<1x32xf32>
    %330 = arith.mulf %325, %327 : vector<1x32xf32>
    %331 = arith.addf %329, %330 : vector<1x32xf32>
    %332 = math.tanh %331 : vector<1x32xf32>
    %333 = arith.mulf %328, %332 : vector<1x32xf32>
    %334 = tpu.concatenate %200, %219, %238, %257, %276, %295, %314, %333 in 0 : vector<1x32xf32>, vector<1x32xf32>, vector<1x32xf32>, vector<1x32xf32>, vector<1x32xf32>, vector<1x32xf32>, vector<1x32xf32>, vector<1x32xf32> -> vector<8x32xf32>
    %335 = arith.truncf %334 : vector<8x32xf32> to vector<8x32xbf16>
    %c0_60 = arith.constant 0 : index
    %c0_61 = arith.constant 0 : index
    %336 = vector.load %arg11[%c0_60, %c0_61] : memref<32x128xbf16, #tpu.memory_space<vmem>>, vector<32x128xbf16>
    %cst_62 = arith.constant dense<0.000000e+00> : vector<8x128xf32>
    %337 = tpu.matmul %335, %336, %cst_62 {dimension_numbers = #tpu.dot_dimension_numbers<[1], [0], [0], [1], [0, 0, 1, 1], [], []>} : vector<8x32xbf16>, vector<32x128xbf16>, vector<8x128xf32> -> vector<8x128xf32>
    %c0_63 = arith.constant 0 : index
    %c0_64 = arith.constant 0 : index
    %338 = vector.load %arg12[%c0_63, %c0_64] : memref<1x128xf32, #tpu.memory_space<vmem>>, vector<1x128xf32>
    %339 = vector.broadcast %338 : vector<1x128xf32> to vector<8x128xf32>
    %340 = arith.addf %337, %339 : vector<8x128xf32>
    %c0_65 = arith.constant 0 : index
    %c0_66 = arith.constant 0 : index
    %341 = vector.load %arg14[%c0_65, %c0_66] : memref<8x128xf32, #tpu.memory_space<vmem>>, vector<8x128xf32>
    tpu.vector_store %arg14[%c0_65, %c0_66], %340 {strides = array<i32>} : memref<8x128xf32, #tpu.memory_space<vmem>>, vector<8x128xf32>,
    return
  }
  func.func @transform_0(%arg0: i32) -> (i32, i32) {
    %c0_i32 = arith.constant 0 : i32
    %c0_i32_0 = arith.constant 0 : i32
    return %arg0, %c0_i32 : i32, i32
  }
  func.func @transform_1(%arg0: i32) -> (i32, i32) {
    %c0_i32 = arith.constant 0 : i32
    %c0_i32_0 = arith.constant 0 : i32
    %c0_i32_1 = arith.constant 0 : i32
    return %c0_i32, %c0_i32_0 : i32, i32
  }
  func.func @transform_2(%arg0: i32) -> (i32, i32) {
    %c0_i32 = arith.constant 0 : i32
    %c0_i32_0 = arith.constant 0 : i32
    %c0_i32_1 = arith.constant 0 : i32
    return %c0_i32, %c0_i32_0 : i32, i32
  }
  func.func @transform_3(%arg0: i32) -> (i32, i32) {
    %c0_i32 = arith.constant 0 : i32
    %c0_i32_0 = arith.constant 0 : i32
    %c0_i32_1 = arith.constant 0 : i32
    return %c0_i32, %c0_i32_0 : i32, i32
  }
  func.func @transform_4(%arg0: i32) -> (i32, i32) {
    %c0_i32 = arith.constant 0 : i32
    %c0_i32_0 = arith.constant 0 : i32
    %c0_i32_1 = arith.constant 0 : i32
    return %c0_i32, %c0_i32_0 : i32, i32
  }
  func.func @transform_5(%arg0: i32) -> (i32, i32) {
    %c0_i32 = arith.constant 0 : i32
    %c0_i32_0 = arith.constant 0 : i32
    %c0_i32_1 = arith.constant 0 : i32
    return %c0_i32, %c0_i32_0 : i32, i32
  }
  func.func @transform_6(%arg0: i32) -> (i32, i32) {
    %c0_i32 = arith.constant 0 : i32
    %c0_i32_0 = arith.constant 0 : i32
    %c0_i32_1 = arith.constant 0 : i32
    return %c0_i32, %c0_i32_0 : i32, i32
  }
  func.func @transform_7(%arg0: i32) -> (i32, i32) {
    %c0_i32 = arith.constant 0 : i32
    %c0_i32_0 = arith.constant 0 : i32
    %c0_i32_1 = arith.constant 0 : i32
    return %c0_i32, %c0_i32_0 : i32, i32
  }
  func.func @transform_8(%arg0: i32) -> (i32, i32) {
    %c0_i32 = arith.constant 0 : i32
    %c0_i32_0 = arith.constant 0 : i32
    %c0_i32_1 = arith.constant 0 : i32
    return %c0_i32, %c0_i32_0 : i32, i32
  }
  func.func @transform_9(%arg0: i32) -> (i32, i32) {
    %c0_i32 = arith.constant 0 : i32
    %c0_i32_0 = arith.constant 0 : i32
    %c0_i32_1 = arith.constant 0 : i32
    return %c0_i32, %c0_i32_0 : i32, i32
  }
  func.func @transform_10(%arg0: i32) -> (i32, i32) {
    %c0_i32 = arith.constant 0 : i32
    %c0_i32_0 = arith.constant 0 : i32
    %c0_i32_1 = arith.constant 0 : i32
    return %c0_i32, %c0_i32_0 : i32, i32
  }
  func.func @transform_11(%arg0: i32) -> (i32, i32) {
    %c0_i32 = arith.constant 0 : i32
    %c0_i32_0 = arith.constant 0 : i32
    %c0_i32_1 = arith.constant 0 : i32
    return %c0_i32, %c0_i32_0 : i32, i32
  }
  func.func @transform_12(%arg0: i32) -> (i32, i32) {
    %c0_i32 = arith.constant 0 : i32
    %c0_i32_0 = arith.constant 0 : i32
    return %arg0, %c0_i32 : i32, i32
  }
  func.func @transform_13(%arg0: i32) -> (i32, i32) {
    %c0_i32 = arith.constant 0 : i32
    %c0_i32_0 = arith.constant 0 : i32
    return %arg0, %c0_i32 : i32, i32
  }
}

</mosaic_0001>

<bundles_post_ra>
// kernel: stack_propagation_forward.1
= control target key start
LH: loop header
LB: loop body
LE: loop exit
PB: predicated region body
PF: predicated region fallthrough
CT: control target
= control target key end

     0   :  { %s2778_s25 = smov 0   ;;  %s3133_s0 = inlined_call_operand.vmem [shape: f32[16,32], index: 0, kind: input, shape index: {}]   ;;  %s3134_s1 = inlined_call_operand.vmem [shape: bf16[32,128], index: 1, kind: input, shape index: {}]   ;;  %s3135_s2 = inlined_call_operand.vmem [shape: bf16[32,128], index: 2, kind: input, shape index: {}]   ;;  %s3136_s3 = inlined_call_operand.vmem [shape: f32[1,128], index: 3, kind: input, shape index: {}]   ;;  %s3137_s4 = inlined_call_operand.vmem [shape: bf16[32,128], index: 4, kind: input, shape index: {}]   ;;  %s3138_s5 = inlined_call_operand.vmem [shape: f32[1,128], index: 5, kind: input, shape index: {}]   ;;  %s3139_s6 = inlined_call_operand.vmem [shape: bf16[32,128], index: 6, kind: input, shape index: {}]   ;;  %s3140_s7 = inlined_call_operand.vmem [shape: bf16[128,128], index: 7, kind: input, shape index: {}]   ;;  %s3141_s8 = inlined_call_operand.vmem [shape: bf16[32,128], index: 8, kind: input, shape index: {}]   ;;  %s3142_s9 = inlined_call_operand.vmem [shape: f32[1,128], index: 9, kind: input, shape index: {}]   ;;  %s3143_s10 = inlined_call_operand.vmem [shape: bf16[32,128], index: 10, kind: input, shape index: {}]   ;;  %s3144_s11 = inlined_call_operand.vmem [shape: f32[1,128], index: 11, kind: input, shape index: {}]   ;;  %s3145_s12 = inlined_call_operand.vmem [shape: f32[16,128], index: 12, kind: output, shape index: {0}]   ;;  %s3146_s13 = inlined_call_operand.vmem [shape: f32[16,128], index: 13, kind: output, shape index: {1}]  }
   0x1 LB: > { %s2212_s26 = sadd.s32 4294967295, %s2701_s25   ;;  %p2216_p0 = scmp.ge.s32.totalorder %s2701_s25, 1  ;;  %s2701_s25 = sphi %s2778_s25, %s24_s25  }
   0x2   : > { %p389_p1 = scmp.lt.s32.totalorder %s2701_s25, 3 }
   0x4   : > { %p390_p2 = pnand %p2216_p0, %p389_p1 }
   0x5   : > { %v2547_v0 = vld [vmem:[%s3134_s1] sm:$0xff] (!%p390_p2)   ;;  %v2703_v1 = vmov (!%p390_p2), 0.0   ;;  %v2548_v2 = vld [vmem:[%s3134_s1 + $0x8] sm:$0xff] (!%p390_p2)   ;;  %vm2704_vm0 = vmmov (!%p390_p2), 0   ;;  %p435_p3 = scmp.lt.s32.totalorder (!%p390_p2), %s2212_s26, 1  ;;  %vm473_vm1 = vcmask (!%p390_p2), 261120  }
   0x6   : > { %393 = sbr.rel (%p390_p2) target bundleno = 11786 (0x2e0a), region = 68  ;;  %2349 = vmatprep.subr.bf16.mxu0 (!%p390_p2), %v2703_v1  ;;  %2357 = vmatprep.subr.bf16.mxu1 (!%p390_p2), %v2703_v1  ;;  %v2804_v3 = vld [vmem:[%s3135_s2] sm:$0xff] (!%p390_p2)   ;;  %v2814_v6 = vld [vmem:[%s3135_s2 + $0x8] sm:$0xff] (!%p390_p2)   ;;  %v2705_v7 = vmov (!%p390_p2), 0   ;;  %s2706_s24 = smov (!%p390_p2), 64   ;;  %vm1221_vm2 = vcmask (!%p390_p2), 1040384  }
   0x7   : > { %2350 = vmatpush3.bf16.msra.mxu0 (!%p390_p2), %v2547_v0  ;;  %2353 = vmatprep.mubr.msk.bf16.mxu0 (!%p390_p2), %vm2704_vm0, %v2703_v1  ;;  %v2220_v12 = vld [vmem:[%s3136_s3] ss:$0 sm:$0xff] (!%p390_p2)  ;;  %v2552_v30 = vld [vmem:[%s3139_s6 + $0x8] sm:$0xff] (!%p390_p2)   ;;  %vm1223_vm3 = vcmask (!%p390_p2), 1041408   ;;  %vm1225_vm4 = vcmask (!%p390_p2), 1042432   ;;  %vm1227_vm5 = vcmask (!%p390_p2), 1043456  }
   0x8   : > { %2351 = vmatprep.subr.bf16.mxu0 (!%p390_p2), %v2703_v1  ;;  %2361 = vmatprep.mubr.msk.bf16.mxu1 (!%p390_p2), %vm2704_vm0, %v2703_v1  ;;  %v2551_v29 = vld [vmem:[%s3139_s6] sm:$0xff] (!%p390_p2)   ;;  %vm1229_vm6 = vcmask (!%p390_p2), 1044480   ;;  %vm1231_vm7 = vcmask (!%p390_p2), 1045504   ;;  %vm1233_vm8 = vcmask (!%p390_p2), 1046528  }
   0x9   : > { %2358 = vmatpush3.bf16.msra.mxu1 (!%p390_p2), %v2551_v29 }
   0xa   : > { %2359 = vmatprep.subr.bf16.mxu1 (!%p390_p2), %v2703_v1 }
   0xb   : > { %2352 = vmatpush3.bf16.msra.mxu0 (!%p390_p2), %v2548_v2 }
   0xc   : > { %2365 = vmatprep.subr.bf16.mxu0 (!%p390_p2), %v2703_v1 }
   0xd   : > { %s3148_s26 = smov (!%p435_p3, %s2212_s26), 1  ;;  %2360 = vmatpush3.bf16.msra.mxu1 %v2552_v30 }
   0xe   : > { %s2799_s14 = sshll.u32 %s3148_s26, 3  ;;  %s2707_s26 = smov 32   ;;  %2373 = vmatprep.subr.bf16.mxu1 %v2703_v1 }
   0xf   : > { %s438_s19 = scalar_lea.vmem %s3133_s0, %s2799_s14  ;;  %s442_s17 = scalar_lea.vmem %s3145_s12, %s2799_s14 }
  0x10   : > { %v448_v4 = vld [vmem:[%s438_s19] sm:$0xff]  ;;  %s446_s15 = scalar_lea.vmem %s3146_s13, %s2799_s14 }
  0x11   : > { %v449_v5 = vpack.c.bf16 %v448_v4, %v448_v4 }
  0x13   : > { %2354 = vmatmul.mubr.msk.bf16.vlgmr.msra.gmra.mrb[0].mxu0 %vm473_vm1, %v449_v5  ;;  %2362 = vmatmul.mubr.msk.bf16.vlgmr.msra.gmra.mrb[0].mxu1 %vm473_vm1, %v449_v5 }
  0x14   : > { %2366 = vmatpush3.bf16.msra.mxu0 %v2804_v3  ;;  %2369 = vmatprep.mubr.msk.bf16.mxu0 %vm2704_vm0, %v2703_v1 }
  0x15   : > { %2367 = vmatprep.subr.bf16.mxu0 %v2703_v1  ;;  %2374 = vmatpush3.bf16.msra.mxu1 %v2804_v3 }
  0x16   : > { %2377 = vmatprep.mubr.msk.bf16.mxu1 %vm2704_vm0, %v2703_v1  ;;  %2375 = vmatprep.subr.bf16.mxu1 %v2703_v1 }
  0x18   : > { %2368 = vmatpush3.bf16.msra.mxu0 %v2814_v6 }
  0x19   : > { %2381 = vmatprep.subr.bf16.mxu0 %v2703_v1  ;;  %2376 = vmatpush3.bf16.msra.mxu1 %v2814_v6 }
  0x1a   : > { %2389 = vmatprep.subr.bf16.mxu1 %v2703_v1 }
  0x1b   : > { %2370 = vmatmul.mubr.bf16.vlgmr.msra.gmra.mrb[4].mxu0 %v2705_v7 }
  0x1c   : > { %2382 = vmatpush3.bf16.msra.mxu0 %v2804_v3  ;;  %2385 = vmatprep.mubr.msk.bf16.mxu0 %vm2704_vm0, %v2703_v1 }
  0x1d   : > { %2383 = vmatprep.subr.bf16.mxu0 %v2703_v1 }
  0x20   : > { %2384 = vmatpush3.bf16.msra.mxu0 %v2814_v6 }
  0x21   : > { %2397 = vmatprep.subr.bf16.mxu0 %v2703_v1 }
  0xe6   : > { %v511_v8 = vpop.f32.mrb[0].mxu0 }
  0xe7   : > { %v2355_v9 = vpop.f32.mrb[1].mxu0  ;;  %v2833_v13 = vadd.f32 %v2220_v12, %v511_v8 }
  0xe8   : > { %v514_v10 = vpop.f32.mrb[2].mxu0 }
  0xe9   : > { %v2356_v11 = vpop.f32.mrb[3].mxu0 }
  0xee   : > { %v633_v14 = vpop.f32.mrb[4].mxu0 }
  0xef   : > { %v639_v15 = vadd.f32 %v633_v14, %v2833_v13  ;;  %v2371_v16 = vpop.f32.mrb[5].mxu0 }
  0xf0   : > { %v636_v17 = vpop.f32.mrb[6].mxu0 }
  0xf1   : > { %2567 = vtanh.f32 %v639_v15  ;;  %v2372_v18 = vpop.f32.mrb[7].mxu0  ;;  %v2230_v20 = vmul.f32 -1.442695, %v639_v15 }
  0xf3   : > { %2569 = vpow2.f32 %v2230_v20 }
  0xfb   : > { %v2568_v19 = vpop.eup %2567 }
  0xfc   : > { %649 = vrot.lane.b32.xlu0 %v2568_v19, %s2706_s24 }
  0xfd   : > { %v2570_v21 = vpop.eup %2569 }
  0xfe   : > { %v643_v22 = vadd.f32 1.0, %v2570_v21 }
 0x100   : > { %2571 = vrcp.f32 %v643_v22 }
 0x10a   : > { %v2572_v23 = vpop.eup %2571 }
 0x10b   : > { %v647_v26 = vmul.f32 0.0, %v2572_v23 }
 0x16e   : > { %v650_v24 = vpop.permute.xlu0 %649 }
 0x16f   : > { %v652_v25 = vmul.f32 %v2572_v23, %v650_v24 }
 0x171   : > { %654 = vrot.lane.b32.xlu0 %v652_v25, %s2707_s26 }
 0x1e3   : > { %v655_v27 = vpop.permute.xlu0 %654 }
 0x1e4   : > { %v657_v28 = vadd.f32 %v655_v27, %v647_v26 }
 0x1e6   : > { %2573 = vtanh.f32 %v657_v28  ;;  %v723_v49 = vrot.slane %v657_v28, 7 }
 0x1f0   : > { %v2574_v31 = vpop.eup %2573 }
 0x1f1   : > { %660 = vrot.lane.b32.xlu1 %v2574_v31, %s2706_s24 }
 0x263   : > { %v661_v32 = vpop.permute.xlu1 %660 }
 0x264   : > { %v2854_v33 = vmul.f32 %v2572_v23, %v661_v32 }
 0x266   : > { %v664_v34 = vpack.c.bf16 %v2854_v33, %v2854_v33 }
 0x268   : > { %666 = vrot.lane.b32.xlu1 %v664_v34, %s2707_s26 }
 0x2da   : > { %v667_v35 = vpop.permute.xlu1 %666 }
 0x2db   : > { %2378 = vmatmul.mubr.msk.bf16.vlgmr.msra.gmra.mrb[4].mxu1 %vm473_vm1, %v667_v35 }
 0x2dc   : > { %2390 = vmatpush3.bf16.msra.mxu1 %v2804_v3  ;;  %2393 = vmatprep.mubr.msk.bf16.mxu1 %vm2704_vm0, %v2703_v1 }
 0x2dd   : > { %2391 = vmatprep.subr.bf16.mxu1 %v2703_v1 }
 0x2e0   : > { %2392 = vmatpush3.bf16.msra.mxu1 %v2814_v6 }
 0x2e1   : > { %2405 = vmatprep.subr.bf16.mxu1 %v2703_v1 }
 0x3ae   : > { %v705_v36 = vpop.f32.mrb[4].mxu1 }
 0x3af   : > { %v712_v37 = vrot.slane %v705_v36, 7  ;;  %v2379_v38 = vpop.f32.mrb[5].mxu1 }
 0x3b0   : > { %v708_v39 = vpop.f32.mrb[6].mxu1 }
 0x3b1   : > { %v714_v40 = vadd.f32 %v712_v37, %v2833_v13  ;;  %v2380_v41 = vpop.f32.mrb[7].mxu1 }
 0x3b3   : > { %2575 = vtanh.f32 %v714_v40  ;;  %v2232_v43 = vmul.f32 -1.442695, %v714_v40 }
 0x3b5   : > { %2577 = vpow2.f32 %v2232_v43 }
 0x3bd   : > { %v2576_v42 = vpop.eup %2575 }
 0x3be   : > { %727 = vrot.lane.b32.xlu0 %v2576_v42, %s2706_s24 }
 0x3bf   : > { %v2578_v44 = vpop.eup %2577 }
 0x3c0   : > { %v718_v45 = vadd.f32 1.0, %v2578_v44 }
 0x3c2   : > { %2579 = vrcp.f32 %v718_v45 }
 0x3cc   : > { %v2580_v46 = vpop.eup %2579 }
 0x3cd   : > { %v725_v50 = vmul.f32 %v2580_v46, %v723_v49 }
 0x430   : > { %v728_v47 = vpop.permute.xlu0 %727 }
 0x431   : > { %v730_v48 = vmul.f32 %v2580_v46, %v728_v47 }
 0x433   : > { %732 = vrot.lane.b32.xlu1 %v730_v48, %s2707_s26 }
 0x4a5   : > { %v733_v51 = vpop.permute.xlu1 %732 }
 0x4a6   : > { %v735_v52 = vadd.f32 %v733_v51, %v725_v50 }
 0x4a8   : > { %2581 = vtanh.f32 %v735_v52  ;;  %v803_v12 = vrot.slane %v735_v52, 7 }
 0x4b2   : > { %v2582_v53 = vpop.eup %2581 }
 0x4b3   : > { %738 = vrot.lane.b32.xlu0 %v2582_v53, %s2706_s24 }
 0x525   : > { %v739_v54 = vpop.permute.xlu0 %738 }
 0x526   : > { %v741_v55 = vmul.f32 %v2580_v46, %v739_v54 }
 0x528   : > { %v742_v56 = vpack.c.bf16 %v741_v55, %v741_v55  ;;  %v1222_v20 = vsel %vm1221_vm2, %v2854_v33, %v741_v55 }
 0x52a   : > { %v744_v57 = vshrl.u32 %v742_v56, 16 }
 0x52c   : > { %746 = vrot.lane.b32.xlu1 %v744_v57, %s2707_s26 }
 0x59e   : > { %v747_v58 = vpop.permute.xlu1 %746 }
 0x59f   : > { %2386 = vmatmul.mubr.msk.bf16.vlgmr.msra.gmra.mrb[8].mxu0 %vm473_vm1, %v747_v58 }
 0x5a0   : > { %2398 = vmatpush3.bf16.msra.mxu0 %v2804_v3  ;;  %2401 = vmatprep.mubr.msk.bf16.mxu0 %vm2704_vm0, %v2703_v1 }
 0x5a1   : > { %2399 = vmatprep.subr.bf16.mxu0 %v2703_v1 }
 0x5a4   : > { %2400 = vmatpush3.bf16.msra.mxu0 %v2814_v6 }
 0x5a5   : > { %2413 = vmatprep.subr.bf16.mxu0 %v2703_v1 }
 0x672   : > { %v785_v59 = vpop.f32.mrb[8].mxu0 }
 0x673   : > { %v792_v60 = vrot.slane %v785_v59, 6  ;;  %v2387_v61 = vpop.f32.mrb[9].mxu0 }
 0x674   : > { %v788_v62 = vpop.f32.mrb[10].mxu0 }
 0x675   : > { %v794_v63 = vadd.f32 %v792_v60, %v2833_v13  ;;  %v2388_v0 = vpop.f32.mrb[11].mxu0 }
 0x677   : > { %2583 = vtanh.f32 %v794_v63  ;;  %v2234_v4 = vmul.f32 -1.442695, %v794_v63 }
 0x679   : > { %2585 = vpow2.f32 %v2234_v4 }
 0x681   : > { %v2584_v2 = vpop.eup %2583 }
 0x682   : > { %807 = vrot.lane.b32.xlu0 %v2584_v2, %s2706_s24 }
 0x683   : > { %v2586_v5 = vpop.eup %2585 }
 0x684   : > { %v798_v8 = vadd.f32 1.0, %v2586_v5 }
 0x686   : > { %2587 = vrcp.f32 %v798_v8 }
 0x690   : > { %v2588_v9 = vpop.eup %2587 }
 0x691   : > { %v805_v14 = vmul.f32 %v2588_v9, %v803_v12 }
 0x6f4   : > { %v808_v10 = vpop.permute.xlu0 %807 }
 0x6f5   : > { %v810_v11 = vmul.f32 %v2588_v9, %v808_v10 }
 0x6f7   : > { %812 = vrot.lane.b32.xlu1 %v810_v11, %s2707_s26 }
 0x769   : > { %v813_v15 = vpop.permute.xlu1 %812 }
 0x76a   : > { %v815_v16 = vadd.f32 %v813_v15, %v805_v14 }
 0x76c   : > { %2589 = vtanh.f32 %v815_v16  ;;  %v882_v38 = vrot.slane %v815_v16, 7 }
 0x776   : > { %v2590_v17 = vpop.eup %2589 }
 0x777   : > { %818 = vrot.lane.b32.xlu0 %v2590_v17, %s2706_s24 }
 0x7e9   : > { %v819_v18 = vpop.permute.xlu0 %818 }
 0x7ea   : > { %v821_v19 = vmul.f32 %v2588_v9, %v819_v18 }
 0x7ec   : > { %v822_v21 = vpack.c.bf16 %v821_v19, %v821_v19  ;;  %v1224_v22 = vsel %vm1223_vm3, %v1222_v20, %v821_v19 }
 0x7ee   : > { %v824_v23 = vrot.slane %v822_v21, 1 }
 0x7f0   : > { %825 = vrot.lane.b32.xlu1 %v824_v23, %s2707_s26 }
 0x862   : > { %v826_v24 = vpop.permute.xlu1 %825 }
 0x863   : > { %2394 = vmatmul.mubr.msk.bf16.vlgmr.msra.gmra.mrb[8].mxu1 %vm473_vm1, %v826_v24 }
 0x864   : > { %2406 = vmatpush3.bf16.msra.mxu1 %v2804_v3  ;;  %2409 = vmatprep.mubr.msk.bf16.mxu1 %vm2704_vm0, %v2703_v1 }
 0x865   : > { %2407 = vmatprep.subr.bf16.mxu1 %v2703_v1 }
 0x868   : > { %2408 = vmatpush3.bf16.msra.mxu1 %v2814_v6 }
 0x869   : > { %2421 = vmatprep.subr.bf16.mxu1 %v2703_v1 }
 0x936   : > { %v864_v25 = vpop.f32.mrb[8].mxu1 }
 0x937   : > { %v871_v26 = vrot.slane %v864_v25, 5  ;;  %v2395_v27 = vpop.f32.mrb[9].mxu1 }
 0x938   : > { %v867_v28 = vpop.f32.mrb[10].mxu1 }
 0x939   : > { %v873_v29 = vadd.f32 %v871_v26, %v2833_v13  ;;  %v2396_v30 = vpop.f32.mrb[11].mxu1 }
 0x93b   : > { %2591 = vtanh.f32 %v873_v29  ;;  %v2236_v32 = vmul.f32 -1.442695, %v873_v29 }
 0x93d   : > { %2593 = vpow2.f32 %v2236_v32 }
 0x945   : > { %v2592_v31 = vpop.eup %2591 }
 0x946   : > { %886 = vrot.lane.b32.xlu0 %v2592_v31, %s2706_s24 }
 0x947   : > { %v2594_v33 = vpop.eup %2593 }
 0x948   : > { %v877_v34 = vadd.f32 1.0, %v2594_v33 }
 0x94a   : > { %2595 = vrcp.f32 %v877_v34 }
 0x954   : > { %v2596_v35 = vpop.eup %2595 }
 0x955   : > { %v884_v39 = vmul.f32 %v2596_v35, %v882_v38 }
 0x9b8   : > { %v887_v36 = vpop.permute.xlu0 %886 }
 0x9b9   : > { %v889_v37 = vmul.f32 %v2596_v35, %v887_v36 }
 0x9bb   : > { %891 = vrot.lane.b32.xlu1 %v889_v37, %s2707_s26 }
 0xa2d   : > { %v892_v40 = vpop.permute.xlu1 %891 }
 0xa2e   : > { %v894_v41 = vadd.f32 %v892_v40, %v884_v39 }
 0xa30   : > { %2597 = vtanh.f32 %v894_v41  ;;  %v963_v63 = vrot.slane %v894_v41, 7 }
 0xa3a   : > { %v2598_v42 = vpop.eup %2597 }
 0xa3b   : > { %897 = vrot.lane.b32.xlu0 %v2598_v42, %s2706_s24 }
 0xaad   : > { %v898_v43 = vpop.permute.xlu0 %897 }
 0xaae   : > { %v900_v44 = vmul.f32 %v2596_v35, %v898_v43 }
 0xab0   : > { %v901_v45 = vpack.c.bf16 %v900_v44, %v900_v44  ;;  %v1226_v46 = vsel %vm1225_vm4, %v1224_v22, %v900_v44 }
 0xab2   : > { %v903_v47 = vshrl.u32 %v901_v45, 16 }
 0xab4   : > { %v905_v48 = vrot.slane %v903_v47, 1 }
 0xab6   : > { %906 = vrot.lane.b32.xlu1 %v905_v48, %s2707_s26 }
 0xb28   : > { %v907_v49 = vpop.permute.xlu1 %906 }
 0xb29   : > { %2402 = vmatmul.mubr.msk.bf16.vlgmr.msra.gmra.mrb[12].mxu0 %vm473_vm1, %v907_v49 }
 0xb2a   : > { %2414 = vmatpush3.bf16.msra.mxu0 %v2804_v3  ;;  %2417 = vmatprep.mubr.msk.bf16.mxu0 %vm2704_vm0, %v2703_v1 }
 0xb2b   : > { %2415 = vmatprep.subr.bf16.mxu0 %v2703_v1 }
 0xb2e   : > { %2416 = vmatpush3.bf16.msra.mxu0 %v2814_v6 }
 0xb2f   : > { %2429 = vmatprep.subr.bf16.mxu0 %v2703_v1 }
 0xbfc   : > { %v945_v50 = vpop.f32.mrb[12].mxu0 }
 0xbfd   : > { %v952_v51 = vrot.slane %v945_v50, 4  ;;  %v2403_v52 = vpop.f32.mrb[13].mxu0 }
 0xbfe   : > { %v948_v53 = vpop.f32.mrb[14].mxu0 }
 0xbff   : > { %v954_v54 = vadd.f32 %v952_v51, %v2833_v13  ;;  %v2404_v55 = vpop.f32.mrb[15].mxu0 }
 0xc01   : > { %2599 = vtanh.f32 %v954_v54  ;;  %v2238_v57 = vmul.f32 -1.442695, %v954_v54 }
 0xc03   : > { %2601 = vpow2.f32 %v2238_v57 }
 0xc0b   : > { %v2600_v56 = vpop.eup %2599 }
 0xc0c   : > { %967 = vrot.lane.b32.xlu0 %v2600_v56, %s2706_s24 }
 0xc0d   : > { %v2602_v58 = vpop.eup %2601 }
 0xc0e   : > { %v958_v59 = vadd.f32 1.0, %v2602_v58 }
 0xc10   : > { %2603 = vrcp.f32 %v958_v59 }
 0xc1a   : > { %v2604_v60 = vpop.eup %2603 }
 0xc1b   : > { %v965_v0 = vmul.f32 %v2604_v60, %v963_v63 }
 0xc7e   : > { %v968_v61 = vpop.permute.xlu0 %967 }
 0xc7f   : > { %v970_v62 = vmul.f32 %v2604_v60, %v968_v61 }
 0xc81   : > { %972 = vrot.lane.b32.xlu1 %v970_v62, %s2707_s26 }
 0xcf3   : > { %v973_v2 = vpop.permute.xlu1 %972 }
 0xcf4   : > { %v975_v4 = vadd.f32 %v973_v2, %v965_v0 }
 0xcf6   : > { %2605 = vtanh.f32 %v975_v4  ;;  %v1042_v26 = vrot.slane %v975_v4, 7 }
 0xd00   : > { %v2606_v5 = vpop.eup %2605 }
 0xd01   : > { %978 = vrot.lane.b32.xlu0 %v2606_v5, %s2706_s24 }
 0xd73   : > { %v979_v8 = vpop.permute.xlu0 %978 }
 0xd74   : > { %v981_v9 = vmul.f32 %v2604_v60, %v979_v8 }
 0xd76   : > { %v982_v10 = vpack.c.bf16 %v981_v9, %v981_v9  ;;  %v1228_v11 = vsel %vm1227_vm5, %v1226_v46, %v981_v9 }
 0xd78   : > { %v984_v12 = vrot.slane %v982_v10, 2 }
 0xd7a   : > { %985 = vrot.lane.b32.xlu1 %v984_v12, %s2707_s26 }
 0xdec   : > { %v986_v14 = vpop.permute.xlu1 %985 }
 0xded   : > { %2410 = vmatmul.mubr.msk.bf16.vlgmr.msra.gmra.mrb[12].mxu1 %vm473_vm1, %v986_v14 }
 0xdee   : > { %2422 = vmatpush3.bf16.msra.mxu1 %v2804_v3  ;;  %2425 = vmatprep.mubr.msk.bf16.mxu1 %vm2704_vm0, %v2703_v1 }
 0xdef   : > { %2423 = vmatprep.subr.bf16.mxu1 %v2703_v1 }
 0xdf2   : > { %2424 = vmatpush3.bf16.msra.mxu1 %v2814_v6 }
 0xdf3   : > { %2437 = vmatprep.subr.bf16.mxu1 %v2703_v1 }
 0xec0   : > { %v1024_v15 = vpop.f32.mrb[12].mxu1 }
 0xec1   : > { %v1031_v16 = vrot.slane %v1024_v15, 3  ;;  %v2411_v17 = vpop.f32.mrb[13].mxu1 }
 0xec2   : > { %v1027_v18 = vpop.f32.mrb[14].mxu1 }
 0xec3   : > { %v1033_v19 = vadd.f32 %v1031_v16, %v2833_v13  ;;  %v2412_v20 = vpop.f32.mrb[15].mxu1 }
 0xec4   : > { %v2554_v20 = vld [vmem:[%s3137_s4 + $0x8] sm:$0xff]  }
 0xec5   : > { %2607 = vtanh.f32 %v1033_v19  ;;  %v2240_v3 = vmul.f32 -1.442695, %v1033_v19 }
 0xec7   : > { %2609 = vpow2.f32 %v2240_v3  ;;  %v2555_v3 = vld [vmem:[%s3140_s7] sm:$0xff]  }
 0xecf   : > { %v2608_v21 = vpop.eup %2607 }
 0xed0   : > { %1046 = vrot.lane.b32.xlu0 %v2608_v21, %s2706_s24 }
 0xed1   : > { %v2610_v22 = vpop.eup %2609 }
 0xed2   : > { %v1037_v23 = vadd.f32 1.0, %v2610_v22  ;;  %v2556_v22 = vld [vmem:[%s3140_s7 + $0x8] sm:$0xff]  }
 0xed4   : > { %2611 = vrcp.f32 %v1037_v23  ;;  %v2557_v23 = vld [vmem:[%s3140_s7 + $0x10] sm:$0xff]  }
 0xede   : > { %v2612_v24 = vpop.eup %2611 }
 0xedf   : > { %v1044_v27 = vmul.f32 %v2612_v24, %v1042_v26  ;;  %v2558_v26 = vld [vmem:[%s3140_s7 + $0x18] sm:$0xff]  }
 0xf42   : > { %v1047_v6 = vpop.permute.xlu0 %1046 }
 0xf43   : > { %v1049_v25 = vmul.f32 %v2612_v24, %v1047_v6 }
 0xf45   : > { %1051 = vrot.lane.b32.xlu1 %v1049_v25, %s2707_s26 }
 0xfb7   : > { %v1052_v28 = vpop.permute.xlu1 %1051 }
 0xfb8   : > { %v1054_v29 = vadd.f32 %v1052_v28, %v1044_v27  ;;  %v2559_v28 = vld [vmem:[%s3140_s7 + $0x20] sm:$0xff]  }
 0xfba   : > { %2613 = vtanh.f32 %v1054_v29  ;;  %v1123_v51 = vrot.slane %v1054_v29, 7  ;;  %v2560_v29 = vld [vmem:[%s3140_s7 + $0x28] sm:$0xff]  }
 0xfc4   : > { %v2614_v30 = vpop.eup %2613 }
 0xfc5   : > { %1057 = vrot.lane.b32.xlu0 %v2614_v30, %s2706_s24  ;;  %v2561_v30 = vld [vmem:[%s3140_s7 + $0x30] sm:$0xff]  }
0x1037   : > { %v1058_v31 = vpop.permute.xlu0 %1057 }
0x1038   : > { %v1060_v32 = vmul.f32 %v2612_v24, %v1058_v31  ;;  %v2982_v31 = vld [vmem:[%s3141_s8] sm:$0xff]  }
0x103a   : > { %v1061_v33 = vpack.c.bf16 %v1060_v32, %v1060_v32  ;;  %v1230_v34 = vsel %vm1229_vm6, %v1228_v11, %v1060_v32 }
0x103c   : > { %v1063_v35 = vshrl.u32 %v1061_v33, 16  ;;  %v2992_v33 = vld [vmem:[%s3141_s8 + $0x8] sm:$0xff]  }
0x103e   : > { %v1065_v36 = vrot.slane %v1063_v35, 2  ;;  %v2245_v35 = vld [vmem:[%s3138_s5] ss:$0 sm:$0xff] }
0x1040   : > { %1066 = vrot.lane.b32.xlu1 %v1065_v36, %s2707_s26 }
0x10b2   : > { %v1067_v37 = vpop.permute.xlu1 %1066 }
0x10b3   : > { %2418 = vmatmul.mubr.msk.bf16.vlgmr.msra.gmra.mrb[16].mxu0 %vm473_vm1, %v1067_v37 }
0x10b4   : > { %2433 = vmatprep.mubr.msk.bf16.mxu0 %vm2704_vm0, %v2703_v1 }
0x1186   : > { %v1105_v38 = vpop.f32.mrb[16].mxu0 }
0x1187   : > { %v1112_v39 = vrot.slane %v1105_v38, 2  ;;  %v2419_v40 = vpop.f32.mrb[17].mxu0 }
0x1188   : > { %v1108_v41 = vpop.f32.mrb[18].mxu0 }
0x1189   : > { %v1114_v42 = vadd.f32 %v1112_v39, %v2833_v13  ;;  %v2420_v43 = vpop.f32.mrb[19].mxu0 }
0x118b   : > { %2615 = vtanh.f32 %v1114_v42  ;;  %v2242_v45 = vmul.f32 -1.442695, %v1114_v42 }
0x118d   : > { %2617 = vpow2.f32 %v2242_v45  ;;  %v2224_v45 = vld [vmem:[%s3142_s9] ss:$0 sm:$0xff] }
0x1195   : > { %v2616_v44 = vpop.eup %2615 }
0x1196   : > { %1127 = vrot.lane.b32.xlu0 %v2616_v44, %s2706_s24 }
0x1197   : > { %v2618_v46 = vpop.eup %2617 }
0x1198   : > { %v1118_v47 = vadd.f32 1.0, %v2618_v46 }
0x119a   : > { %2619 = vrcp.f32 %v1118_v47 }
0x11a4   : > { %v2620_v48 = vpop.eup %2619 }
0x11a5   : > { %v1125_v52 = vmul.f32 %v2620_v48, %v1123_v51 }
0x1208   : > { %v1128_v49 = vpop.permute.xlu0 %1127 }
0x1209   : > { %v1130_v50 = vmul.f32 %v2620_v48, %v1128_v49 }
0x120b   : > { %1132 = vrot.lane.b32.xlu1 %v1130_v50, %s2707_s26 }
0x127d   : > { %v1133_v53 = vpop.permute.xlu1 %1132 }
0x127e   : > { %v1135_v54 = vadd.f32 %v1133_v53, %v1125_v52 }
0x1280   : > { %2621 = vtanh.f32 %v1135_v54  ;;  %v1202_v16 = vrot.slane %v1135_v54, 7 }
0x128a   : > { %v2622_v55 = vpop.eup %2621 }
0x128b   : > { %1138 = vrot.lane.b32.xlu0 %v2622_v55, %s2706_s24 }
0x12fd   : > { %v1139_v56 = vpop.permute.xlu0 %1138 }
0x12fe   : > { %v1141_v57 = vmul.f32 %v2620_v48, %v1139_v56 }
0x1300   : > { %v1142_v58 = vpack.c.bf16 %v1141_v57, %v1141_v57  ;;  %v1232_v59 = vsel %vm1231_vm7, %v1230_v34, %v1141_v57  ;;  %v2563_v34 = vld [vmem:[%s3140_s7 + $0x38] sm:$0xff]  }
0x1302   : > { %v1144_v60 = vrot.slane %v1142_v58, 3 }
0x1304   : > { %1145 = vrot.lane.b32.xlu1 %v1144_v60, %s2707_s26 }
0x1376   : > { %v1146_v61 = vpop.permute.xlu1 %1145 }
0x1377   : > { %2426 = vmatmul.mubr.msk.bf16.vlgmr.msra.gmra.mrb[16].mxu1 %vm473_vm1, %v1146_v61 }
0x1378   : > { %2453 = vmatprep.mubr.msk.bf16.mxu1 %vm2704_vm0, %v2703_v1  ;;  %2438 = vmatpush3.bf16.msra.mxu1 %v2555_v3 }
0x1379   : > { %2439 = vmatprep.subr.bf16.mxu1 %v2703_v1 }
0x137c   : > { %2440 = vmatpush3.bf16.msra.mxu1 %v2556_v22 }
0x137d   : > { %2441 = vmatprep.subr.bf16.mxu1 %v2703_v1 }
0x1380   : > { %2442 = vmatpush3.bf16.msra.mxu1 %v2557_v23 }
0x1381   : > { %2443 = vmatprep.subr.bf16.mxu1 %v2703_v1 }
0x1384   : > { %2444 = vmatpush3.bf16.msra.mxu1 %v2558_v26 }
0x1385   : > { %2445 = vmatprep.subr.bf16.mxu1 %v2703_v1 }
0x1388   : > { %2446 = vmatpush3.bf16.msra.mxu1 %v2559_v28 }
0x1389   : > { %2447 = vmatprep.subr.bf16.mxu1 %v2703_v1 }
0x138c   : > { %2448 = vmatpush3.bf16.msra.mxu1 %v2560_v29 }
0x138d   : > { %2449 = vmatprep.subr.bf16.mxu1 %v2703_v1 }
0x1390   : > { %2450 = vmatpush3.bf16.msra.mxu1 %v2561_v30 }
0x1391   : > { %2451 = vmatprep.subr.bf16.mxu1 %v2703_v1 }
0x1394   : > { %2452 = vmatpush3.bf16.msra.mxu1 %v2563_v34 }
0x1395   : > { %2489 = vmatprep.subr.bf16.mxu1 %v2703_v1 }
0x144a   : > { %v1184_v62 = vpop.f32.mrb[16].mxu1 }
0x144b   : > { %v1191_v63 = vrot.slane %v1184_v62, 1  ;;  %v2427_v0 = vpop.f32.mrb[17].mxu1 }
0x144c   : > { %v1187_v2 = vpop.f32.mrb[18].mxu1 }
0x144d   : > { %v1193_v4 = vadd.f32 %v1191_v63, %v2833_v13  ;;  %v2428_v5 = vpop.f32.mrb[19].mxu1  ;;  %v2553_v13 = vld [vmem:[%s3137_s4] sm:$0xff]  }
0x144e   : > { %2430 = vmatpush3.bf16.msra.mxu0 %v2553_v13 }
0x144f   : > { %2623 = vtanh.f32 %v1193_v4  ;;  %v2244_v9 = vmul.f32 -1.442695, %v1193_v4  ;;  %2431 = vmatprep.subr.bf16.mxu0 %v2703_v1 }
0x1451   : > { %2625 = vpow2.f32 %v2244_v9 }
0x1452   : > { %2432 = vmatpush3.bf16.msra.mxu0 %v2554_v20 }
0x1453   : > { %2457 = vmatprep.subr.bf16.mxu0 %v2703_v1 }
0x1459   : > { %v2624_v8 = vpop.eup %2623 }
0x145a   : > { %1206 = vrot.lane.b32.xlu0 %v2624_v8, %s2706_s24 }
0x145b   : > { %v2626_v10 = vpop.eup %2625 }
0x145c   : > { %v1197_v11 = vadd.f32 1.0, %v2626_v10 }
0x145e   : > { %2627 = vrcp.f32 %v1197_v11 }
0x1468   : > { %v2628_v12 = vpop.eup %2627 }
0x1469   : > { %v1204_v17 = vmul.f32 %v2628_v12, %v1202_v16 }
0x14cc   : > { %v1207_v14 = vpop.permute.xlu0 %1206 }
0x14cd   : > { %v1209_v15 = vmul.f32 %v2628_v12, %v1207_v14 }
0x14cf   : > { %1211 = vrot.lane.b32.xlu1 %v1209_v15, %s2707_s26 }
0x1541   : > { %v1212_v18 = vpop.permute.xlu1 %1211 }
0x1542   : > { %v1214_v19 = vadd.f32 %v1212_v18, %v1204_v17 }
0x1544   : > { %2629 = vtanh.f32 %v1214_v19 }
0x154e   : > { %v2630_v21 = vpop.eup %2629 }
0x154f   : > { %1217 = vrot.lane.b32.xlu0 %v2630_v21, %s2706_s24 }
0x15c1   : > { %v1218_v24 = vpop.permute.xlu0 %1217 }
0x15c2   : > { %v1220_v6 = vmul.f32 %v2628_v12, %v1218_v24 }
0x15c4   : > { %v1234_v25 = vsel %vm1233_vm8, %v1232_v59, %v1220_v6 }
0x15c5   : > { %v1235_v27 = vpack.c.bf16 %v1234_v25, %v1234_v25 }
0x15c7   : > { %1248 = vrot.lane.b32.xlu1 %v1235_v27, %s2707_s26 }
0x1639   : > { %v1249_v32 = vpop.permute.xlu1 %1248 }
0x163a   : > { %2434 = vmatmul.mubr.msk.bf16.vlgmr.msra.gmra.mrb[20].mxu0 %vm473_vm1, %v1249_v32 }
0x163b   : > { %2458 = vmatpush3.bf16.msra.mxu0 %v2982_v31  ;;  %2461 = vmatprep.mubr.msk.bf16.mxu0 %vm2704_vm0, %v2703_v1 }
0x163c   : > { %2459 = vmatprep.subr.bf16.mxu0 %v2703_v1 }
0x163f   : > { %2460 = vmatpush3.bf16.msra.mxu0 %v2992_v33 }
0x1640   : > { %2465 = vmatprep.subr.bf16.mxu0 %v2703_v1 }
0x1642   : > { %2462 = vmatmul.mubr.bf16.vlgmr.msra.gmra.mrb[24].mxu0 %v2705_v7 }
0x1643   : > { %2466 = vmatpush3.bf16.msra.mxu0 %v2982_v31  ;;  %2469 = vmatprep.mubr.msk.bf16.mxu0 %vm2704_vm0, %v2703_v1 }
0x1644   : > { %2467 = vmatprep.subr.bf16.mxu0 %v2703_v1 }
0x1647   : > { %2468 = vmatpush3.bf16.msra.mxu0 %v2992_v33 }
0x1648   : > { %2473 = vmatprep.subr.bf16.mxu0 %v2703_v1 }
0x170d   : > { %v1299_v7 = vpop.f32.mrb[20].mxu0 }
0x170e   : > { %v1300_v36 = vadd.f32 %v2245_v35, %v1299_v7  ;;  %v2435_v37 = vpop.f32.mrb[21].mxu0 }
0x170f   : > { %v1302_v38 = vpop.f32.mrb[22].mxu0 }
0x1710   : > { %1305 = vst [vmem:[%s442_s17] sm:$0xff] %v1300_v36  ;;  %v1306_v39 = vpack.c.bf16 %v1300_v36, %v1300_v36  ;;  %v2436_v40 = vpop.f32.mrb[23].mxu0 }
0x1712   : > { %2454 = vmatmul.mubr.bf16.vlgmr.msra.gmra.mrb[0].mxu1 %v1306_v39 }
0x1713   : > { %2490 = vmatpush3.bf16.msra.mxu1 %v2982_v31  ;;  %2493 = vmatprep.mubr.msk.bf16.mxu1 %vm2704_vm0, %v2703_v1 }
0x1714   : > { %2491 = vmatprep.subr.bf16.mxu1 %v2703_v1 }
0x1715   : > { %v1462_v41 = vpop.f32.mrb[24].mxu0 }
0x1716   : > { %v2463_v42 = vpop.f32.mrb[25].mxu0 }
0x1717   : > { %2492 = vmatpush3.bf16.msra.mxu1 %v2992_v33  ;;  %v1465_v43 = vpop.f32.mrb[26].mxu0 }
0x1718   : > { %2505 = vmatprep.subr.bf16.mxu1 %v2703_v1  ;;  %v2464_v44 = vpop.f32.mrb[27].mxu0 }
0x17e5   : > { %v1405_v46 = vpop.f32.mrb[0].mxu1 }
0x17e6   : > { %v3023_v47 = vadd.f32 %v2224_v45, %v1405_v46  ;;  %v2455_v48 = vpop.f32.mrb[1].mxu1 }
0x17e7   : > { %v1408_v49 = vpop.f32.mrb[2].mxu1 }
0x17e8   : > { %v1468_v50 = vadd.f32 %v3023_v47, %v1462_v41  ;;  %v2456_v51 = vpop.f32.mrb[3].mxu1 }
0x17ea   : > { %2631 = vtanh.f32 %v1468_v50  ;;  %v2259_v53 = vmul.f32 -1.442695, %v1468_v50 }
0x17ec   : > { %2633 = vpow2.f32 %v2259_v53 }
0x17f4   : > { %v2632_v52 = vpop.eup %2631 }
0x17f5   : > { %1478 = vrot.lane.b32.xlu0 %v2632_v52, %s2706_s24 }
0x17f6   : > { %v2634_v54 = vpop.eup %2633 }
0x17f7   : > { %v1472_v55 = vadd.f32 1.0, %v2634_v54 }
0x17f9   : > { %2635 = vrcp.f32 %v1472_v55 }
0x1803   : > { %v2636_v56 = vpop.eup %2635 }
0x1804   : > { %v1476_v59 = vmul.f32 0.0, %v2636_v56 }
0x1867   : > { %v1479_v57 = vpop.permute.xlu0 %1478 }
0x1868   : > { %v1481_v58 = vmul.f32 %v2636_v56, %v1479_v57 }
0x186a   : > { %1483 = vrot.lane.b32.xlu1 %v1481_v58, %s2707_s26 }
0x18dc   : > { %v1484_v60 = vpop.permute.xlu1 %1483 }
0x18dd   : > { %v1486_v61 = vadd.f32 %v1484_v60, %v1476_v59 }
0x18df   : > { %2637 = vtanh.f32 %v1486_v61  ;;  %v1552_v20 = vrot.slane %v1486_v61, 7 }
0x18e9   : > { %v2638_v62 = vpop.eup %2637 }
0x18ea   : > { %1489 = vrot.lane.b32.xlu0 %v2638_v62, %s2706_s24 }
0x195c   : > { %v1490_v63 = vpop.permute.xlu0 %1489 }
0x195d   : > { %v3029_v0 = vmul.f32 %v2636_v56, %v1490_v63 }
0x195f   : > { %v1493_v2 = vpack.c.bf16 %v3029_v0, %v3029_v0 }
0x1961   : > { %1495 = vrot.lane.b32.xlu1 %v1493_v2, %s2707_s26 }
0x19d3   : > { %v1496_v4 = vpop.permute.xlu1 %1495 }
0x19d4   : > { %2470 = vmatmul.mubr.msk.bf16.vlgmr.msra.gmra.mrb[28].mxu0 %vm473_vm1, %v1496_v4 }
0x19d5   : > { %2474 = vmatpush3.bf16.msra.mxu0 %v2982_v31  ;;  %2477 = vmatprep.mubr.msk.bf16.mxu0 %vm2704_vm0, %v2703_v1 }
0x19d6   : > { %2475 = vmatprep.subr.bf16.mxu0 %v2703_v1 }
0x19d9   : > { %2476 = vmatpush3.bf16.msra.mxu0 %v2992_v33 }
0x19da   : > { %2481 = vmatprep.subr.bf16.mxu0 %v2703_v1 }
0x1aa7   : > { %v1534_v5 = vpop.f32.mrb[28].mxu0 }
0x1aa8   : > { %v1541_v8 = vrot.slane %v1534_v5, 7  ;;  %v2471_v9 = vpop.f32.mrb[29].mxu0 }
0x1aa9   : > { %v1537_v10 = vpop.f32.mrb[30].mxu0 }
0x1aaa   : > { %v1543_v11 = vadd.f32 %v3023_v47, %v1541_v8  ;;  %v2472_v12 = vpop.f32.mrb[31].mxu0 }
0x1aac   : > { %2639 = vtanh.f32 %v1543_v11  ;;  %v2261_v15 = vmul.f32 -1.442695, %v1543_v11 }
0x1aae   : > { %2641 = vpow2.f32 %v2261_v15 }
0x1ab6   : > { %v2640_v14 = vpop.eup %2639 }
0x1ab7   : > { %1556 = vrot.lane.b32.xlu0 %v2640_v14, %s2706_s24 }
0x1ab8   : > { %v2642_v16 = vpop.eup %2641 }
0x1ab9   : > { %v1547_v17 = vadd.f32 1.0, %v2642_v16 }
0x1abb   : > { %2643 = vrcp.f32 %v1547_v17 }
0x1ac5   : > { %v2644_v18 = vpop.eup %2643 }
0x1ac6   : > { %v1554_v21 = vmul.f32 %v2644_v18, %v1552_v20 }
0x1b29   : > { %v1557_v19 = vpop.permute.xlu0 %1556 }
0x1b2a   : > { %v1559_v13 = vmul.f32 %v2644_v18, %v1557_v19 }
0x1b2c   : > { %1561 = vrot.lane.b32.xlu1 %v1559_v13, %s2707_s26 }
0x1b9e   : > { %v1562_v3 = vpop.permute.xlu1 %1561 }
0x1b9f   : > { %v1564_v22 = vadd.f32 %v1562_v3, %v1554_v21 }
0x1ba1   : > { %2645 = vtanh.f32 %v1564_v22  ;;  %v1632_v42 = vrot.slane %v1564_v22, 7 }
0x1bab   : > { %v2646_v23 = vpop.eup %2645 }
0x1bac   : > { %1567 = vrot.lane.b32.xlu0 %v2646_v23, %s2706_s24 }
0x1c1e   : > { %v1568_v24 = vpop.permute.xlu0 %1567 }
0x1c1f   : > { %v1570_v6 = vmul.f32 %v2644_v18, %v1568_v24 }
0x1c21   : > { %v1571_v25 = vpack.c.bf16 %v1570_v6, %v1570_v6  ;;  %v2050_v50 = vsel %vm1221_vm2, %v3029_v0, %v1570_v6 }
0x1c23   : > { %v1573_v26 = vshrl.u32 %v1571_v25, 16 }
0x1c25   : > { %1575 = vrot.lane.b32.xlu1 %v1573_v26, %s2707_s26 }
0x1c97   : > { %v1576_v27 = vpop.permute.xlu1 %1575 }
0x1c98   : > { %2478 = vmatmul.mubr.msk.bf16.vlgmr.msra.gmra.mrb[32].mxu0 %vm473_vm1, %v1576_v27 }
0x1c99   : > { %2482 = vmatpush3.bf16.msra.mxu0 %v2982_v31  ;;  %2485 = vmatprep.mubr.msk.bf16.mxu0 %vm2704_vm0, %v2703_v1 }
0x1c9a   : > { %2483 = vmatprep.subr.bf16.mxu0 %v2703_v1 }
0x1c9d   : > { %2484 = vmatpush3.bf16.msra.mxu0 %v2992_v33 }
0x1c9e   : > { %2497 = vmatprep.subr.bf16.mxu0 %v2703_v1 }
0x1d6b   : > { %v1614_v28 = vpop.f32.mrb[32].mxu0 }
0x1d6c   : > { %v1621_v29 = vrot.slane %v1614_v28, 6  ;;  %v2479_v30 = vpop.f32.mrb[33].mxu0 }
0x1d6d   : > { %v1617_v32 = vpop.f32.mrb[34].mxu0 }
0x1d6e   : > { %v1623_v34 = vadd.f32 %v3023_v47, %v1621_v29  ;;  %v2480_v35 = vpop.f32.mrb[35].mxu0 }
0x1d70   : > { %2647 = vtanh.f32 %v1623_v34  ;;  %v2263_v36 = vmul.f32 -1.442695, %v1623_v34 }
0x1d72   : > { %2649 = vpow2.f32 %v2263_v36 }
0x1d7a   : > { %v2648_v7 = vpop.eup %2647 }
0x1d7b   : > { %1636 = vrot.lane.b32.xlu0 %v2648_v7, %s2706_s24 }
0x1d7c   : > { %v2650_v37 = vpop.eup %2649 }
0x1d7d   : > { %v1627_v38 = vadd.f32 1.0, %v2650_v37 }
0x1d7f   : > { %2651 = vrcp.f32 %v1627_v38 }
0x1d89   : > { %v2652_v39 = vpop.eup %2651 }
0x1d8a   : > { %v1634_v43 = vmul.f32 %v2652_v39, %v1632_v42 }
0x1ded   : > { %v1637_v40 = vpop.permute.xlu0 %1636 }
0x1dee   : > { %v1639_v41 = vmul.f32 %v2652_v39, %v1637_v40 }
0x1df0   : > { %1641 = vrot.lane.b32.xlu1 %v1639_v41, %s2707_s26 }
0x1e62   : > { %v1642_v44 = vpop.permute.xlu1 %1641 }
0x1e63   : > { %v1644_v45 = vadd.f32 %v1642_v44, %v1634_v43 }
0x1e65   : > { %2653 = vtanh.f32 %v1644_v45  ;;  %v1711_v8 = vrot.slane %v1644_v45, 7 }
0x1e6f   : > { %v2654_v46 = vpop.eup %2653 }
0x1e70   : > { %1647 = vrot.lane.b32.xlu0 %v2654_v46, %s2706_s24 }
0x1ee2   : > { %v1648_v48 = vpop.permute.xlu0 %1647 }
0x1ee3   : > { %v1650_v49 = vmul.f32 %v2652_v39, %v1648_v48 }
0x1ee5   : > { %v1651_v51 = vpack.c.bf16 %v1650_v49, %v1650_v49  ;;  %v2051_v52 = vsel %vm1223_vm3, %v2050_v50, %v1650_v49 }
0x1ee7   : > { %v1653_v53 = vrot.slane %v1651_v51, 1 }
0x1ee9   : > { %1654 = vrot.lane.b32.xlu1 %v1653_v53, %s2707_s26 }
0x1f5b   : > { %v1655_v54 = vpop.permute.xlu1 %1654 }
0x1f5c   : > { %2486 = vmatmul.mubr.msk.bf16.vlgmr.msra.gmra.mrb[36].mxu0 %vm473_vm1, %v1655_v54 }
0x1f5d   : > { %2498 = vmatpush3.bf16.msra.mxu0 %v2982_v31  ;;  %2501 = vmatprep.mubr.msk.bf16.mxu0 %vm2704_vm0, %v2703_v1 }
0x1f5e   : > { %2499 = vmatprep.subr.bf16.mxu0 %v2703_v1 }
0x1f61   : > { %2500 = vmatpush3.bf16.msra.mxu0 %v2992_v33 }
0x1f62   : > { %2513 = vmatprep.subr.bf16.mxu0 %v2703_v1 }
0x202f   : > { %v1693_v55 = vpop.f32.mrb[36].mxu0 }
0x2030   : > { %v1700_v56 = vrot.slane %v1693_v55, 5  ;;  %v2487_v57 = vpop.f32.mrb[37].mxu0 }
0x2031   : > { %v1696_v58 = vpop.f32.mrb[38].mxu0 }
0x2032   : > { %v1702_v59 = vadd.f32 %v3023_v47, %v1700_v56  ;;  %v2488_v60 = vpop.f32.mrb[39].mxu0 }
0x2034   : > { %2655 = vtanh.f32 %v1702_v59  ;;  %v2265_v62 = vmul.f32 -1.442695, %v1702_v59 }
0x2036   : > { %2657 = vpow2.f32 %v2265_v62 }
0x203e   : > { %v2656_v61 = vpop.eup %2655 }
0x203f   : > { %1715 = vrot.lane.b32.xlu0 %v2656_v61, %s2706_s24 }
0x2040   : > { %v2658_v63 = vpop.eup %2657 }
0x2041   : > { %v1706_v0 = vadd.f32 1.0, %v2658_v63 }
0x2043   : > { %2659 = vrcp.f32 %v1706_v0 }
0x204d   : > { %v2660_v2 = vpop.eup %2659 }
0x204e   : > { %v1713_v9 = vmul.f32 %v2660_v2, %v1711_v8 }
0x20b1   : > { %v1716_v4 = vpop.permute.xlu0 %1715 }
0x20b2   : > { %v1718_v5 = vmul.f32 %v2660_v2, %v1716_v4 }
0x20b4   : > { %1720 = vrot.lane.b32.xlu1 %v1718_v5, %s2707_s26 }
0x2126   : > { %v1721_v10 = vpop.permute.xlu1 %1720 }
0x2127   : > { %v1723_v11 = vadd.f32 %v1721_v10, %v1713_v9 }
0x2129   : > { %2661 = vtanh.f32 %v1723_v11  ;;  %v1792_v32 = vrot.slane %v1723_v11, 7 }
0x2133   : > { %v2662_v12 = vpop.eup %2661 }
0x2134   : > { %1726 = vrot.lane.b32.xlu0 %v2662_v12, %s2706_s24 }
0x21a6   : > { %v1727_v14 = vpop.permute.xlu0 %1726 }
0x21a7   : > { %v1729_v15 = vmul.f32 %v2660_v2, %v1727_v14 }
0x21a9   : > { %v1730_v16 = vpack.c.bf16 %v1729_v15, %v1729_v15  ;;  %v2052_v17 = vsel %vm1225_vm4, %v2051_v52, %v1729_v15 }
0x21ab   : > { %v1732_v18 = vshrl.u32 %v1730_v16, 16 }
0x21ad   : > { %v1734_v19 = vrot.slane %v1732_v18, 1 }
0x21af   : > { %1735 = vrot.lane.b32.xlu1 %v1734_v19, %s2707_s26 }
0x2221   : > { %v1736_v13 = vpop.permute.xlu1 %1735 }
0x2222   : > { %2494 = vmatmul.mubr.msk.bf16.vlgmr.msra.gmra.mrb[20].mxu1 %vm473_vm1, %v1736_v13 }
0x2223   : > { %2506 = vmatpush3.bf16.msra.mxu1 %v2982_v31  ;;  %2509 = vmatprep.mubr.msk.bf16.mxu1 %vm2704_vm0, %v2703_v1 }
0x2224   : > { %2507 = vmatprep.subr.bf16.mxu1 %v2703_v1 }
0x2227   : > { %2508 = vmatpush3.bf16.msra.mxu1 %v2992_v33 }
0x2228   : > { %2521 = vmatprep.subr.bf16.mxu1 %v2703_v1 }
0x22f5   : > { %v1774_v20 = vpop.f32.mrb[20].mxu1 }
0x22f6   : > { %v1781_v21 = vrot.slane %v1774_v20, 4  ;;  %v2495_v3 = vpop.f32.mrb[21].mxu1 }
0x22f7   : > { %v1777_v22 = vpop.f32.mrb[22].mxu1 }
0x22f8   : > { %v1783_v23 = vadd.f32 %v3023_v47, %v1781_v21  ;;  %v2496_v24 = vpop.f32.mrb[23].mxu1 }
0x22fa   : > { %2663 = vtanh.f32 %v1783_v23  ;;  %v2267_v25 = vmul.f32 -1.442695, %v1783_v23 }
0x22fc   : > { %2665 = vpow2.f32 %v2267_v25 }
0x2304   : > { %v2664_v6 = vpop.eup %2663 }
0x2305   : > { %1796 = vrot.lane.b32.xlu0 %v2664_v6, %s2706_s24 }
0x2306   : > { %v2666_v26 = vpop.eup %2665 }
0x2307   : > { %v1787_v27 = vadd.f32 1.0, %v2666_v26 }
0x2309   : > { %2667 = vrcp.f32 %v1787_v27 }
0x2313   : > { %v2668_v28 = vpop.eup %2667 }
0x2314   : > { %v1794_v34 = vmul.f32 %v2668_v28, %v1792_v32 }
0x2377   : > { %v1797_v29 = vpop.permute.xlu0 %1796 }
0x2378   : > { %v1799_v30 = vmul.f32 %v2668_v28, %v1797_v29 }
0x237a   : > { %1801 = vrot.lane.b32.xlu1 %v1799_v30, %s2707_s26 }
0x23ec   : > { %v1802_v35 = vpop.permute.xlu1 %1801 }
0x23ed   : > { %v1804_v7 = vadd.f32 %v1802_v35, %v1794_v34 }
0x23ef   : > { %2669 = vtanh.f32 %v1804_v7 }
0x23f9   : > { %v2670_v36 = vpop.eup %2669 }
0x23fa   : > { %1807 = vrot.lane.b32.xlu0 %v2670_v36, %s2706_s24 }
0x246c   : > { %v1808_v37 = vpop.permute.xlu0 %1807 }
0x246d   : > { %v1810_v38 = vmul.f32 %v2668_v28, %v1808_v37 }
0x246f   : > { %v1811_v39 = vpack.c.bf16 %v1810_v38, %v1810_v38  ;;  %v2053_v40 = vsel %vm1227_vm5, %v2052_v17, %v1810_v38 }
0x2471   : > { %v1813_v41 = vrot.slane %v1811_v39, 2 }
0x2473   : > { %1814 = vrot.lane.b32.xlu1 %v1813_v41, %s2707_s26 }
0x24e5   : > { %v1815_v42 = vpop.permute.xlu1 %1814 }
0x24e6   : > { %2502 = vmatmul.mubr.msk.bf16.vlgmr.msra.gmra.mrb[40].mxu0 %vm473_vm1, %v1815_v42 }
0x24e7   : > { %2514 = vmatpush3.bf16.msra.mxu0 %v2982_v31  ;;  %2517 = vmatprep.mubr.msk.bf16.mxu0 %vm2704_vm0, %v2703_v1 }
0x24e8   : > { %2515 = vmatprep.subr.bf16.mxu0 %v2703_v1 }
0x24eb   : > { %2516 = vmatpush3.bf16.msra.mxu0 %v2992_v33  ;;  %v1871_v33 = vrot.slane %v1804_v7, 7 }
0x25b9   : > { %v1853_v43 = vpop.f32.mrb[40].mxu0 }
0x25ba   : > { %v1860_v44 = vrot.slane %v1853_v43, 3  ;;  %v2503_v45 = vpop.f32.mrb[41].mxu0 }
0x25bb   : > { %v1856_v46 = vpop.f32.mrb[42].mxu0 }
0x25bc   : > { %v1862_v48 = vadd.f32 %v3023_v47, %v1860_v44  ;;  %v2504_v49 = vpop.f32.mrb[43].mxu0 }
0x25be   : > { %2671 = vtanh.f32 %v1862_v48  ;;  %v2269_v51 = vmul.f32 -1.442695, %v1862_v48  ;;  %v2566_v48 = vld [vmem:[%s3143_s10 + $0x8] sm:$0xff]  }
0x25c0   : > { %2673 = vpow2.f32 %v2269_v51 }
0x25c8   : > { %v2672_v50 = vpop.eup %2671 }
0x25c9   : > { %1875 = vrot.lane.b32.xlu0 %v2672_v50, %s2706_s24 }
0x25ca   : > { %v2674_v31 = vpop.eup %2673 }
0x25cb   : > { %v1866_v52 = vadd.f32 1.0, %v2674_v31 }
0x25cd   : > { %2675 = vrcp.f32 %v1866_v52 }
0x25d7   : > { %v2676_v53 = vpop.eup %2675 }
0x25d8   : > { %v1873_v56 = vmul.f32 %v2676_v53, %v1871_v33 }
0x263b   : > { %v1876_v54 = vpop.permute.xlu0 %1875 }
0x263c   : > { %v1878_v55 = vmul.f32 %v2676_v53, %v1876_v54  ;;  %v2274_v54 = vld [vmem:[%s3144_s11] ss:$0 sm:$0xff] }
0x263e   : > { %1880 = vrot.lane.b32.xlu1 %v1878_v55, %s2707_s26 }
0x26b0   : > { %v1881_v57 = vpop.permute.xlu1 %1880 }
0x26b1   : > { %v1883_v58 = vadd.f32 %v1881_v57, %v1873_v56 }
0x26b3   : > { %2677 = vtanh.f32 %v1883_v58  ;;  %v1952_v20 = vrot.slane %v1883_v58, 7 }
0x26bd   : > { %v2678_v59 = vpop.eup %2677 }
0x26be   : > { %1886 = vrot.lane.b32.xlu0 %v2678_v59, %s2706_s24 }
0x2730   : > { %v1887_v60 = vpop.permute.xlu0 %1886 }
0x2731   : > { %v1889_v61 = vmul.f32 %v2676_v53, %v1887_v60 }
0x2733   : > { %v1890_v62 = vpack.c.bf16 %v1889_v61, %v1889_v61  ;;  %v2054_v63 = vsel %vm1229_vm6, %v2053_v40, %v1889_v61 }
0x2735   : > { %v1892_v0 = vshrl.u32 %v1890_v62, 16 }
0x2737   : > { %v1894_v2 = vrot.slane %v1892_v0, 2 }
0x2739   : > { %1895 = vrot.lane.b32.xlu1 %v1894_v2, %s2707_s26 }
0x27ab   : > { %v1896_v4 = vpop.permute.xlu1 %1895 }
0x27ac   : > { %2510 = vmatmul.mubr.msk.bf16.vlgmr.msra.gmra.mrb[24].mxu1 %vm473_vm1, %v1896_v4 }
0x27ad   : > { %2525 = vmatprep.mubr.msk.bf16.mxu1 %vm2704_vm0, %v2703_v1 }
0x287f   : > { %v1934_v5 = vpop.f32.mrb[24].mxu1 }
0x2880   : > { %v1941_v8 = vrot.slane %v1934_v5, 2  ;;  %v2511_v9 = vpop.f32.mrb[25].mxu1 }
0x2881   : > { %v1937_v10 = vpop.f32.mrb[26].mxu1 }
0x2882   : > { %v1943_v11 = vadd.f32 %v3023_v47, %v1941_v8  ;;  %v2512_v12 = vpop.f32.mrb[27].mxu1 }
0x2884   : > { %2679 = vtanh.f32 %v1943_v11  ;;  %v2271_v15 = vmul.f32 -1.442695, %v1943_v11 }
0x2886   : > { %2681 = vpow2.f32 %v2271_v15 }
0x288e   : > { %v2680_v14 = vpop.eup %2679 }
0x288f   : > { %1956 = vrot.lane.b32.xlu0 %v2680_v14, %s2706_s24 }
0x2890   : > { %v2682_v16 = vpop.eup %2681 }
0x2891   : > { %v1947_v17 = vadd.f32 1.0, %v2682_v16 }
0x2893   : > { %2683 = vrcp.f32 %v1947_v17 }
0x289d   : > { %v2684_v18 = vpop.eup %2683 }
0x289e   : > { %v1954_v21 = vmul.f32 %v2684_v18, %v1952_v20 }
0x2901   : > { %v1957_v19 = vpop.permute.xlu0 %1956 }
0x2902   : > { %v1959_v13 = vmul.f32 %v2684_v18, %v1957_v19 }
0x2904   : > { %1961 = vrot.lane.b32.xlu1 %v1959_v13, %s2707_s26 }
0x2976   : > { %v1962_v3 = vpop.permute.xlu1 %1961 }
0x2977   : > { %v1964_v22 = vadd.f32 %v1962_v3, %v1954_v21 }
0x2979   : > { %2685 = vtanh.f32 %v1964_v22  ;;  %v2031_v43 = vrot.slane %v1964_v22, 7 }
0x2983   : > { %v2686_v23 = vpop.eup %2685 }
0x2984   : > { %1967 = vrot.lane.b32.xlu0 %v2686_v23, %s2706_s24 }
0x29f6   : > { %v1968_v24 = vpop.permute.xlu0 %1967 }
0x29f7   : > { %v1970_v6 = vmul.f32 %v2684_v18, %v1968_v24 }
0x29f9   : > { %v1971_v25 = vpack.c.bf16 %v1970_v6, %v1970_v6  ;;  %v2055_v26 = vsel %vm1231_vm7, %v2054_v63, %v1970_v6 }
0x29fb   : > { %v1973_v27 = vrot.slane %v1971_v25, 3 }
0x29fd   : > { %1974 = vrot.lane.b32.xlu1 %v1973_v27, %s2707_s26 }
0x2a6f   : > { %v1975_v28 = vpop.permute.xlu1 %1974 }
0x2a70   : > { %2518 = vmatmul.mubr.msk.bf16.vlgmr.msra.gmra.mrb[44].mxu0 %vm473_vm1, %v1975_v28 }
0x2b43   : > { %v2013_v29 = vpop.f32.mrb[44].mxu0 }
0x2b44   : > { %v2020_v30 = vrot.slane %v2013_v29, 1  ;;  %v2519_v32 = vpop.f32.mrb[45].mxu0 }
0x2b45   : > { %v2016_v34 = vpop.f32.mrb[46].mxu0 }
0x2b46   : > { %v2022_v35 = vadd.f32 %v3023_v47, %v2020_v30  ;;  %v2520_v7 = vpop.f32.mrb[47].mxu0  ;;  %v2565_v47 = vld [vmem:[%s3143_s10] sm:$0xff]  }
0x2b47   : > { %2522 = vmatpush3.bf16.msra.mxu1 %v2565_v47 }
0x2b48   : > { %2687 = vtanh.f32 %v2022_v35  ;;  %v2273_v37 = vmul.f32 -1.442695, %v2022_v35  ;;  %2523 = vmatprep.subr.bf16.mxu1 %v2703_v1 }
0x2b4a   : > { %2689 = vpow2.f32 %v2273_v37 }
0x2b4b   : > { %2524 = vmatpush3.bf16.msra.mxu1 %v2566_v48 }
0x2b52   : > { %v2688_v36 = vpop.eup %2687 }
0x2b53   : > { %2035 = vrot.lane.b32.xlu0 %v2688_v36, %s2706_s24 }
0x2b54   : > { %v2690_v38 = vpop.eup %2689 }
0x2b55   : > { %v2026_v39 = vadd.f32 1.0, %v2690_v38 }
0x2b57   : > { %2691 = vrcp.f32 %v2026_v39 }
0x2b61   : > { %v2692_v40 = vpop.eup %2691 }
0x2b62   : > { %v2033_v44 = vmul.f32 %v2692_v40, %v2031_v43 }
0x2bc5   : > { %v2036_v41 = vpop.permute.xlu0 %2035 }
0x2bc6   : > { %v2038_v42 = vmul.f32 %v2692_v40, %v2036_v41 }
0x2bc8   : > { %2040 = vrot.lane.b32.xlu1 %v2038_v42, %s2707_s26 }
0x2c3a   : > { %v2041_v45 = vpop.permute.xlu1 %2040 }
0x2c3b   : > { %v2043_v46 = vadd.f32 %v2041_v45, %v2033_v44 }
0x2c3d   : > { %2693 = vtanh.f32 %v2043_v46 }
0x2c47   : > { %v2694_v49 = vpop.eup %2693 }
0x2c48   : > { %2046 = vrot.lane.b32.xlu0 %v2694_v49, %s2706_s24 }
0x2cba   : > { %v2047_v50 = vpop.permute.xlu0 %2046 }
0x2cbb   : > { %v2049_v51 = vmul.f32 %v2692_v40, %v2047_v50 }
0x2cbd   : > { %v2056_v31 = vsel %vm1233_vm8, %v2055_v26, %v2049_v51 }
0x2cbe   : > { %v2057_v52 = vpack.c.bf16 %v2056_v31, %v2056_v31 }
0x2cc0   : > { %2070 = vrot.lane.b32.xlu1 %v2057_v52, %s2707_s26 }
0x2d32   : > { %v2071_v53 = vpop.permute.xlu1 %2070 }
0x2d33   : > { %2526 = vmatmul.mubr.msk.bf16.vlgmr.msra.gmra.mrb[28].mxu1 %vm473_vm1, %v2071_v53 }
0x2e06   : > { %v2121_v1 = vpop.f32.mrb[28].mxu1 }
0x2e07   : > { %v2122_v55 = vadd.f32 %v2274_v54, %v2121_v1  ;;  %v2527_v33 = vpop.f32.mrb[29].mxu1 }
0x2e08   : > { %v2124_v56 = vpop.f32.mrb[30].mxu1 }
0x2e09   : > { %2127 = vst [vmem:[%s446_s15] sm:$0xff] %v2122_v55  ;;  %v2528_v57 = vpop.f32.mrb[31].mxu1 }
0x2e0a PF: > { %s24_s25 = sadd.s32 1, %s2701_s25  }
0x2e0b   : > { %p21_p4 = scmp.ge.s32.totalorder %s24_s25, 4  }
0x2e0d   :  { %23 = sbr.rel (!%p21_p4) target bundleno = 1 (0x1), region = 110 }

</bundles_post_ra>
